<compile_context>
chip_gen: v7x
topology: tpu7x:2x2x1
jax: 0.10.0
libtpu: 0.0.40
codegen_flags: <defaults>
</compile_context>

<pallas_src>
import functools

import jax
import jax.numpy as jnp
from jax.experimental import pallas as pl
from jax.experimental.pallas import tpu as pltpu

# -------------------- configuration (lane-aligned demo shapes) ----------------
BATCH = 1024        # total rows processed
TB = 256            # rows per grid step  -> grid = (4,)
D = 128             # input_size  (multiple of 128 -> lane-dense)
H = 128             # hidden_size (== D so all parameter tensors pack into 2 arrays)
FLOW_LENGTH = 3     # number of flow transforms


# ------------------------------ Pallas kernel ---------------------------------
def nf_residual_kernel(flow_length, x_ref, noise_ref, w_ref, b_ref, out_ref):
    """Fused: base linear + (noise * val_noise) + flow_length residual MLPs.

    w_ref: (1 + 2L, D, D)  = [wb, w1_0..w1_{L-1}, w2_0..w2_{L-1}]
    b_ref: (2 + 2L, 1, D)  = [bb, val_noise, b1_0..b1_{L-1}, b2_0..b2_{L-1}]
    Static integer indexing into the packed refs is free (no runtime cost).
    """
    x = x_ref[...]                                                  # (TB, D)

    # base_model(x): Linear(D, D) stand-in (single MXU matmul, f32 accum).
    base = jnp.dot(x, w_ref[0], preferred_element_type=jnp.float32) + b_ref[0]

    # random_noise = randn_like(base_out) * val_noise
    z = noise_ref[...] * b_ref[1]                                   # (TB, D)

    # NormalizingFlows: z = z + transform(z), repeated flow_length times
    # (log_det_J of the reference is unused by the outer forward -> skipped).
    for l in range(flow_length):                                    # static unroll
        h = jnp.dot(z, w_ref[1 + l],
                    preferred_element_type=jnp.float32) + b_ref[2 + l]
        h = jnp.maximum(h, 0.0)                                     # ReLU
        t = jnp.dot(h, w_ref[1 + flow_length + l],
                    preferred_element_type=jnp.float32) + b_ref[2 + flow_length + l]
        z = z + t

    out_ref[...] = (base + z).astype(out_ref.dtype)                 # lane-dense store


# -------------------------------- wrapper --------------------------------------
def pack_params(p, flow_length):
    """Pack the 7 parameter tensors into 2 contiguous arrays (2 DMAs)."""
    assert p["w1"].shape[2] == p["w1"].shape[1], "packing requires H == D"
    w_pack = jnp.concatenate([p["wb"][None], p["w1"], p["w2"]], axis=0)   # (1+2L, D, D)
    b_pack = jnp.concatenate([p["bb"][None], p["vn"][None],
                              p["b1"], p["b2"]], axis=0)                  # (2+2L, 1, D)
    return w_pack, b_pack


def nf_residual_forward(x, noise, params):
    """x: (B, D) float32, noise: (B, D) float32 standard-normal draws."""
    B, Din = x.shape
    assert Din == D
    assert B % TB == 0, "demo wrapper assumes B divisible by TB"

    w_pack, b_pack = pack_params(params, FLOW_LENGTH)

    grid = (pl.cdiv(B, TB),)

    batch_spec = pl.BlockSpec((TB, D), lambda i: (i, 0))
    w_spec = pl.BlockSpec(w_pack.shape, lambda i: (0, 0, 0))   # whole pack, resident
    b_spec = pl.BlockSpec(b_pack.shape, lambda i: (0, 0, 0))   # whole pack, resident

    kernel = functools.partial(nf_residual_kernel, FLOW_LENGTH)

    return pl.pallas_call(
        kernel,
        out_shape=jax.ShapeDtypeStruct((B, D), jnp.float32),
        grid_spec=pltpu.PrefetchScalarGridSpec(
            num_scalar_prefetch=0,
            grid=grid,
            in_specs=[
                batch_spec,   # x      (TB, 128)  lane-dense
                batch_spec,   # noise  (TB, 128)  lane-dense
                w_spec,       # packed weights (1+2L, 128, 128)
                b_spec,       # packed biases / val_noise (2+2L, 1, 128)
            ],
            out_specs=batch_spec,
        ),
        compiler_params=pltpu.CompilerParams(
            dimension_semantics=("parallel",)),   # batch axis sharded across TCs (v7x)
    )(x, noise, w_pack, b_pack)


# ------------------------ deterministic parameter init -------------------------
def init_params(key):
    ks = jax.random.split(key, 7)
    scale = 0.1
    wb = scale * jax.random.normal(ks[0], (D, D), jnp.float32)
    bb = scale * jax.random.normal(ks[1], (1, D), jnp.float32)
    # __init__ sets val_noise = zeros; after visualize_NF it becomes Var (>0).
    # Use a nonzero value here so the noise/flow datapath is exercised end-to-end.
    vn = jnp.abs(scale * jax.random.normal(ks[2], (1, D), jnp.float32))
    w1 = scale * jax.random.normal(ks[3], (FLOW_LENGTH, D, H), jnp.float32)
    b1 = scale * jax.random.normal(ks[4], (FLOW_LENGTH, 1, H), jnp.float32)
    w2 = scale * jax.random.normal(ks[5], (FLOW_LENGTH, H, D), jnp.float32)
    b2 = scale * jax.random.normal(ks[6], (FLOW_LENGTH, 1, D), jnp.float32)
    return dict(wb=wb, bb=bb, vn=vn, w1=w1, b1=b1, w2=w2, b2=b2)


# ----------------------------- pure-JAX reference -------------------------------
def reference_forward(x, noise, p):
    base = x @ p["wb"] + p["bb"]
    z = noise * p["vn"]
    for l in range(FLOW_LENGTH):
        h = jnp.maximum(z @ p["w1"][l] + p["b1"][l], 0.0)
        z = z + (h @ p["w2"][l] + p["b2"][l])
    return base + z


if __name__ == "__main__":
    key = jax.random.PRNGKey(0)
    kx, kn, kp = jax.random.split(key, 3)

    x = jax.random.normal(kx, (BATCH, D), jnp.float32)
    noise = jax.random.normal(kn, (BATCH, D), jnp.float32)  # randn_like(base_model(x))
    params = init_params(kp)

    out = nf_residual_forward(x, noise, params)
    out = jax.block_until_ready(out)

    ref = reference_forward(x, noise, params)
    assert out.shape == (BATCH, D)
    assert jnp.allclose(out, ref, atol=1e-4, rtol=1e-4), "mismatch vs reference"

    print("KERNEL_OK")
</pallas_src>

<mosaic_0001>
module attributes {stable_mosaic.version = 11 : i64} {
  func.func @nf_residual_kernel(%arg0: i32, %arg1: memref<256x128xf32, #tpu.memory_space<vmem>>, %arg2: memref<256x128xf32, #tpu.memory_space<vmem>>, %arg3: memref<7x128x128xf32, #tpu.memory_space<vmem>>, %arg4: memref<8x1x128xf32, #tpu.memory_space<vmem>>, %arg5: memref<256x128xf32, #tpu.memory_space<vmem>>) attributes {dimension_semantics = [#tpu.dimension_semantics<parallel>], iteration_bounds = array<i64: 4>, scalar_prefetch = 0 : i64, scratch_operands = 0 : i64, tpu.core_type = #tpu.core_type<tc>, window_params = [{transform_indices = @transform_0, window_bounds = array<i64: 256, 128>}, {transform_indices = @transform_1, window_bounds = array<i64: 256, 128>}, {pipeline_mode = #tpu.pipeline_mode<synchronous>, transform_indices = @transform_2, window_bounds = array<i64: 7, 128, 128>}, {pipeline_mode = #tpu.pipeline_mode<synchronous>, transform_indices = @transform_3, window_bounds = array<i64: 8, 1, 128>}, {transform_indices = @transform_4, window_bounds = array<i64: 256, 128>}]} {
    %c0 = arith.constant 0 : index
    %c0_0 = arith.constant 0 : index
    %0 = vector.load %arg1[%c0, %c0_0] : memref<256x128xf32, #tpu.memory_space<vmem>>, vector<256x128xf32>
    %c0_1 = arith.constant 0 : index
    %c0_2 = arith.constant 0 : index
    %c0_3 = arith.constant 0 : index
    %1 = vector.load %arg3[%c0_1, %c0_2, %c0_3] : memref<7x128x128xf32, #tpu.memory_space<vmem>>, vector<1x128x128xf32>
    %2 = vector.shape_cast %1 : vector<1x128x128xf32> to vector<128x128xf32>
    %cst = arith.constant dense<0.000000e+00> : vector<256x128xf32>
    %3 = tpu.matmul %0, %2, %cst {dimension_numbers = #tpu.dot_dimension_numbers<[1], [0], [0], [1], [0, 0, 1, 1], [], []>} : vector<256x128xf32>, vector<128x128xf32>, vector<256x128xf32> -> vector<256x128xf32>
    %c0_4 = arith.constant 0 : index
    %c0_5 = arith.constant 0 : index
    %c0_6 = arith.constant 0 : index
    %4 = vector.load %arg4[%c0_4, %c0_5, %c0_6] : memref<8x1x128xf32, #tpu.memory_space<vmem>>, vector<1x1x128xf32>
    %5 = vector.shape_cast %4 : vector<1x1x128xf32> to vector<1x128xf32>
    %6 = vector.broadcast %5 : vector<1x128xf32> to vector<256x128xf32>
    %7 = arith.addf %3, %6 : vector<256x128xf32>
    %c0_7 = arith.constant 0 : index
    %c0_8 = arith.constant 0 : index
    %8 = vector.load %arg2[%c0_7, %c0_8] : memref<256x128xf32, #tpu.memory_space<vmem>>, vector<256x128xf32>
    %c1 = arith.constant 1 : index
    %c0_9 = arith.constant 0 : index
    %c0_10 = arith.constant 0 : index
    %9 = vector.load %arg4[%c1, %c0_9, %c0_10] : memref<8x1x128xf32, #tpu.memory_space<vmem>>, vector<1x1x128xf32>
    %10 = vector.shape_cast %9 : vector<1x1x128xf32> to vector<1x128xf32>
    %11 = vector.broadcast %10 : vector<1x128xf32> to vector<256x128xf32>
    %12 = arith.mulf %8, %11 : vector<256x128xf32>
    %c1_11 = arith.constant 1 : index
    %c0_12 = arith.constant 0 : index
    %c0_13 = arith.constant 0 : index
    %13 = vector.load %arg3[%c1_11, %c0_12, %c0_13] : memref<7x128x128xf32, #tpu.memory_space<vmem>>, vector<1x128x128xf32>
    %14 = vector.shape_cast %13 : vector<1x128x128xf32> to vector<128x128xf32>
    %cst_14 = arith.constant dense<0.000000e+00> : vector<256x128xf32>
    %15 = tpu.matmul %12, %14, %cst_14 {dimension_numbers = #tpu.dot_dimension_numbers<[1], [0], [0], [1], [0, 0, 1, 1], [], []>} : vector<256x128xf32>, vector<128x128xf32>, vector<256x128xf32> -> vector<256x128xf32>
    %c2 = arith.constant 2 : index
    %c0_15 = arith.constant 0 : index
    %c0_16 = arith.constant 0 : index
    %16 = vector.load %arg4[%c2, %c0_15, %c0_16] : memref<8x1x128xf32, #tpu.memory_space<vmem>>, vector<1x1x128xf32>
    %17 = vector.shape_cast %16 : vector<1x1x128xf32> to vector<1x128xf32>
    %18 = vector.broadcast %17 : vector<1x128xf32> to vector<256x128xf32>
    %19 = arith.addf %15, %18 : vector<256x128xf32>
    %cst_17 = arith.constant 0.000000e+00 : f32
    %20 = vector.broadcast %cst_17 : f32 to vector<256x128xf32>
    %21 = arith.maximumf %19, %20 : vector<256x128xf32>
    %c4 = arith.constant 4 : index
    %c0_18 = arith.constant 0 : index
    %c0_19 = arith.constant 0 : index
    %22 = vector.load %arg3[%c4, %c0_18, %c0_19] : memref<7x128x128xf32, #tpu.memory_space<vmem>>, vector<1x128x128xf32>
    %23 = vector.shape_cast %22 : vector<1x128x128xf32> to vector<128x128xf32>
    %cst_20 = arith.constant dense<0.000000e+00> : vector<256x128xf32>
    %24 = tpu.matmul %21, %23, %cst_20 {dimension_numbers = #tpu.dot_dimension_numbers<[1], [0], [0], [1], [0, 0, 1, 1], [], []>} : vector<256x128xf32>, vector<128x128xf32>, vector<256x128xf32> -> vector<256x128xf32>
    %c5 = arith.constant 5 : index
    %c0_21 = arith.constant 0 : index
    %c0_22 = arith.constant 0 : index
    %25 = vector.load %arg4[%c5, %c0_21, %c0_22] : memref<8x1x128xf32, #tpu.memory_space<vmem>>, vector<1x1x128xf32>
    %26 = vector.shape_cast %25 : vector<1x1x128xf32> to vector<1x128xf32>
    %27 = vector.broadcast %26 : vector<1x128xf32> to vector<256x128xf32>
    %28 = arith.addf %24, %27 : vector<256x128xf32>
    %29 = arith.addf %12, %28 : vector<256x128xf32>
    %c2_23 = arith.constant 2 : index
    %c0_24 = arith.constant 0 : index
    %c0_25 = arith.constant 0 : index
    %30 = vector.load %arg3[%c2_23, %c0_24, %c0_25] : memref<7x128x128xf32, #tpu.memory_space<vmem>>, vector<1x128x128xf32>
    %31 = vector.shape_cast %30 : vector<1x128x128xf32> to vector<128x128xf32>
    %cst_26 = arith.constant dense<0.000000e+00> : vector<256x128xf32>
    %32 = tpu.matmul %29, %31, %cst_26 {dimension_numbers = #tpu.dot_dimension_numbers<[1], [0], [0], [1], [0, 0, 1, 1], [], []>} : vector<256x128xf32>, vector<128x128xf32>, vector<256x128xf32> -> vector<256x128xf32>
    %c3 = arith.constant 3 : index
    %c0_27 = arith.constant 0 : index
    %c0_28 = arith.constant 0 : index
    %33 = vector.load %arg4[%c3, %c0_27, %c0_28] : memref<8x1x128xf32, #tpu.memory_space<vmem>>, vector<1x1x128xf32>
    %34 = vector.shape_cast %33 : vector<1x1x128xf32> to vector<1x128xf32>
    %35 = vector.broadcast %34 : vector<1x128xf32> to vector<256x128xf32>
    %36 = arith.addf %32, %35 : vector<256x128xf32>
    %cst_29 = arith.constant 0.000000e+00 : f32
    %37 = vector.broadcast %cst_29 : f32 to vector<256x128xf32>
    %38 = arith.maximumf %36, %37 : vector<256x128xf32>
    %c5_30 = arith.constant 5 : index
    %c0_31 = arith.constant 0 : index
    %c0_32 = arith.constant 0 : index
    %39 = vector.load %arg3[%c5_30, %c0_31, %c0_32] : memref<7x128x128xf32, #tpu.memory_space<vmem>>, vector<1x128x128xf32>
    %40 = vector.shape_cast %39 : vector<1x128x128xf32> to vector<128x128xf32>
    %cst_33 = arith.constant dense<0.000000e+00> : vector<256x128xf32>
    %41 = tpu.matmul %38, %40, %cst_33 {dimension_numbers = #tpu.dot_dimension_numbers<[1], [0], [0], [1], [0, 0, 1, 1], [], []>} : vector<256x128xf32>, vector<128x128xf32>, vector<256x128xf32> -> vector<256x128xf32>
    %c6 = arith.constant 6 : index
    %c0_34 = arith.constant 0 : index
    %c0_35 = arith.constant 0 : index
    %42 = vector.load %arg4[%c6, %c0_34, %c0_35] : memref<8x1x128xf32, #tpu.memory_space<vmem>>, vector<1x1x128xf32>
    %43 = vector.shape_cast %42 : vector<1x1x128xf32> to vector<1x128xf32>
    %44 = vector.broadcast %43 : vector<1x128xf32> to vector<256x128xf32>
    %45 = arith.addf %41, %44 : vector<256x128xf32>
    %46 = arith.addf %29, %45 : vector<256x128xf32>
    %c3_36 = arith.constant 3 : index
    %c0_37 = arith.constant 0 : index
    %c0_38 = arith.constant 0 : index
    %47 = vector.load %arg3[%c3_36, %c0_37, %c0_38] : memref<7x128x128xf32, #tpu.memory_space<vmem>>, vector<1x128x128xf32>
    %48 = vector.shape_cast %47 : vector<1x128x128xf32> to vector<128x128xf32>
    %cst_39 = arith.constant dense<0.000000e+00> : vector<256x128xf32>
    %49 = tpu.matmul %46, %48, %cst_39 {dimension_numbers = #tpu.dot_dimension_numbers<[1], [0], [0], [1], [0, 0, 1, 1], [], []>} : vector<256x128xf32>, vector<128x128xf32>, vector<256x128xf32> -> vector<256x128xf32>
    %c4_40 = arith.constant 4 : index
    %c0_41 = arith.constant 0 : index
    %c0_42 = arith.constant 0 : index
    %50 = vector.load %arg4[%c4_40, %c0_41, %c0_42] : memref<8x1x128xf32, #tpu.memory_space<vmem>>, vector<1x1x128xf32>
    %51 = vector.shape_cast %50 : vector<1x1x128xf32> to vector<1x128xf32>
    %52 = vector.broadcast %51 : vector<1x128xf32> to vector<256x128xf32>
    %53 = arith.addf %49, %52 : vector<256x128xf32>
    %cst_43 = arith.constant 0.000000e+00 : f32
    %54 = vector.broadcast %cst_43 : f32 to vector<256x128xf32>
    %55 = arith.maximumf %53, %54 : vector<256x128xf32>
    %c6_44 = arith.constant 6 : index
    %c0_45 = arith.constant 0 : index
    %c0_46 = arith.constant 0 : index
    %56 = vector.load %arg3[%c6_44, %c0_45, %c0_46] : memref<7x128x128xf32, #tpu.memory_space<vmem>>, vector<1x128x128xf32>
    %57 = vector.shape_cast %56 : vector<1x128x128xf32> to vector<128x128xf32>
    %cst_47 = arith.constant dense<0.000000e+00> : vector<256x128xf32>
    %58 = tpu.matmul %55, %57, %cst_47 {dimension_numbers = #tpu.dot_dimension_numbers<[1], [0], [0], [1], [0, 0, 1, 1], [], []>} : vector<256x128xf32>, vector<128x128xf32>, vector<256x128xf32> -> vector<256x128xf32>
    %c7 = arith.constant 7 : index
    %c0_48 = arith.constant 0 : index
    %c0_49 = arith.constant 0 : index
    %59 = vector.load %arg4[%c7, %c0_48, %c0_49] : memref<8x1x128xf32, #tpu.memory_space<vmem>>, vector<1x1x128xf32>
    %60 = vector.shape_cast %59 : vector<1x1x128xf32> to vector<1x128xf32>
    %61 = vector.broadcast %60 : vector<1x128xf32> to vector<256x128xf32>
    %62 = arith.addf %58, %61 : vector<256x128xf32>
    %63 = arith.addf %46, %62 : vector<256x128xf32>
    %64 = arith.addf %7, %63 : vector<256x128xf32>
    %c0_50 = arith.constant 0 : index
    %c0_51 = arith.constant 0 : index
    %65 = vector.load %arg5[%c0_50, %c0_51] : memref<256x128xf32, #tpu.memory_space<vmem>>, vector<256x128xf32>
    tpu.vector_store %arg5[%c0_50, %c0_51], %64 {strides = array<i32>} : memref<256x128xf32, #tpu.memory_space<vmem>>, vector<256x128xf32>,
    return
  }
  func.func @transform_0(%arg0: i32) -> (i32, i32) {
    %c0_i32 = arith.constant 0 : i32
    %c0_i32_0 = arith.constant 0 : i32
    return %arg0, %c0_i32 : i32, i32
  }
  func.func @transform_1(%arg0: i32) -> (i32, i32) {
    %c0_i32 = arith.constant 0 : i32
    %c0_i32_0 = arith.constant 0 : i32
    return %arg0, %c0_i32 : i32, i32
  }
  func.func @transform_2(%arg0: i32) -> (i32, i32, i32) {
    %c0_i32 = arith.constant 0 : i32
    %c0_i32_0 = arith.constant 0 : i32
    %c0_i32_1 = arith.constant 0 : i32
    %c0_i32_2 = arith.constant 0 : i32
    return %c0_i32, %c0_i32_0, %c0_i32_1 : i32, i32, i32
  }
  func.func @transform_3(%arg0: i32) -> (i32, i32, i32) {
    %c0_i32 = arith.constant 0 : i32
    %c0_i32_0 = arith.constant 0 : i32
    %c0_i32_1 = arith.constant 0 : i32
    %c0_i32_2 = arith.constant 0 : i32
    return %c0_i32, %c0_i32_0, %c0_i32_1 : i32, i32, i32
  }
  func.func @transform_4(%arg0: i32) -> (i32, i32) {
    %c0_i32 = arith.constant 0 : i32
    %c0_i32_0 = arith.constant 0 : i32
    return %arg0, %c0_i32 : i32, i32
  }
}

</mosaic_0001>

<bundles_post_ra>
// kernel: tpu_custom_call.1
= control target key start
LH: loop header
LB: loop body
LE: loop exit
PB: predicated region body
PF: predicated region fallthrough
CT: control target
= control target key end

     0   :  { %s5129_s0 = inlined_call_operand.hbm [shape: f32[1024,128], index: 0, kind: input, shape index: {}]   ;;  %s5130_s1 = inlined_call_operand.hbm [shape: f32[1024,128], index: 1, kind: input, shape index: {}]   ;;  %s5131_s2 = inlined_call_operand.hbm [shape: f32[7,128,128], index: 2, kind: input, shape index: {}]   ;;  %s5132_s3 = inlined_call_operand.vmem [shape: f32[8,1,128], index: 3, kind: input, shape index: {}]   ;;  %s5133_s4 = inlined_call_operand.hbm [shape: f32[1024,128], index: 4, kind: output, shape index: {}]  }
   0x1   :  { %5141 = sst [smem:[#allocation16_spill]] %s5129_s0 }
   0x2   :  { %5142 = sst [smem:[#allocation17_spill]] %s5131_s2 }
   0x3   :  { %9 = vsyncpa [#allocation3], 0 }
   0x4   :  { %11 = vsyncpa [#allocation3 + $0x1], 0 }
   0x5   :  { %12 = vsyncpa [#allocation6], 0 }
   0x6   :  { %14 = vsyncpa [#allocation6 + $0x1], 0 }
   0x7   :  { %15 = vsyncpa [#allocation4], 0 }
   0x8   :  { %17 = vsyncpa [#allocation4 + $0x1], 0  ;;  %s4065_s15 = smov 0   ;;  %s4067_s16 = smov 0  }
   0x9   :  { %s4069_s17 = smov 0   ;;  %s4071_s18 = smov 0  }
   0xa LB: > { %s4086_s19 = sadd.s32 4294967295, %s4030_s18   ;;  %s2500_s20 = sadd.s32 4294967294, %s4030_s18   ;;  %s4030_s18 = sphi %s4071_s18, %s5168_s18   ;;  %s4026_s17 = sphi %s4069_s17, %s5167_s17   ;;  %s4022_s16 = sphi %s4067_s16, %s5166_s16   ;;  %s4018_s15 = sphi %s4065_s15, %s5165_s15  }
   0xb   : > { %p43_p0 = scmp.ne.s32.totalorder %s4022_s16, %s4018_s15  ;;  %p5134_p1 = scmp.eq.s32.totalorder %s4086_s19, 0 }
   0xc   : > { %p141_p3 = scmp.eq.s32.totalorder %s2500_s20, 3  ;;  %p2501_p5 = scmp.ge.s32.totalorder %s4030_s18, 1 }
   0xd   : > { %p4095_p4 = por %p5134_p1, %p43_p0  ;;  %p148_p7 = scmp.lt.s32.totalorder %s4030_s18, 5 }
   0xe   : > { %p4100_p6 = por %p141_p3, %p43_p0  ;;  %s4032_s24 = smov [#allocation7]  }
   0xf   : > { %s5143_s21 = scalar_select %p4095_p4, 1, 0 }
  0x10   : > { %s5144_s22 = scalar_select %p4100_p6, 1, 0 }
  0x11   : > { %p4105_p8 = pnand %p2501_p5, %p148_p7  ;;  %s160_s25 = sshll.u32 %s4032_s24, 4  ;;  %s161_s25 = int_to_ptr.vmem [resolvable:$true] %s160_s25 }
  0x12   : > { %s4118_s27 = sadd.s32 1, %s4030_s18   ;;  %s30_s28 = sadd.s32 1, %s4026_s17 }
  0x13   : > { %s5145_s23 = scalar_select %p4105_p8, 1, 0 }
  0x14   : > { %p3812_p9 = pneg %p4105_p8  ;;  %s27_s29 = ssub.s32 %s4030_s18, %s4118_s27 }
  0x15   : > { %s5147_s2 = sld [smem:[#allocation17_spill]] }
  0x16   : > { %p4113_p10 = pnand %p3812_p9, %p5134_p1 }
  0x18   : > { %p3870_p12 = pneg %p4113_p10 }
  0x1b   : > { %s3868_s6 = scalar_lea.hbm %s5147_s2, 14336 }
  0x1c   : > { %p3869_p11 = scmp.ne.s32.totalorder %s5147_s2, %s3868_s6  ;;  %p3875_p3 = scmp.lt.u32.totalorder %s3868_s6, %s5147_s2 }
  0x1e   : > { %p3871_p13 = pnand %p3870_p12, %p3869_p11 }
  0x20   : > { %p3872_p0 = pneg %p3871_p13 }
  0x22   : > { %p3877_p5 = pnand %p3875_p3, %p3872_p0 }
  0x24   : > { %3880 = shalt.err (!%p3877_p5)
}
  0x25   : > { %s3881_s11 = scalar_lea.vmem %s161_s25, 14336  ;;  %p3889_p2 = scmp.lt.s32.totalorder %s161_s25, %s161_s25 }
  0x26   : > { %p3882_p7 = scmp.ne.s32.totalorder %s161_s25, %s3881_s11  ;;  %p3890_p6 = scmp.lt.s32.totalorder %s3881_s11, %s3881_s11 }
  0x28   : > { %p3884_p9 = pnand %p3882_p7, %p3870_p12  ;;  %p3891_p4 = por %p3890_p6, %p3889_p2 }
  0x2a   : > { %p3885_p1 = pneg %p3884_p9 }
  0x2c   : > { %p3892_p8 = pnand %p3891_p4, %p3885_p1 }
  0x2e   : > { %3895 = shalt.err (!%p3892_p8)
}
  0x2f   : > { %s5137_s12 = smov 128   ;;  %s5139_s13 = smov 8  }
  0x30   : > { %3815 = dma.hbm_to_vmem [thread:$0]  (!%p4113_p10), %s5147_s2, 14336, %s161_s25, [#allocation6], %s5137_s12, %s5137_s12, %s5139_s13  }
  0x31   : > { %p28_p1 = scmp.eq.s32.totalorder %s27_s29, 0  ;;  %p37_p2 = scmp.ne.s32.totalorder %s4026_s17, %s4022_s16 }
  0x32   : > { %p38_p4 = scmp.eq.s32.totalorder %s4030_s18, 0  ;;  %p3828_p6 = scmp.lt.s32.totalorder %s4030_s18, 4 }
  0x33   : > { %s4147_s24 = scalar_select %p28_p1, %s4026_s17, %s30_s28  }
  0x34   : > { %p39_p8 = por %p38_p4, %p37_p2  ;;  %p5149_p11 = scmp.eq.s32.totalorder %s4086_s19, 3 }
  0x35   : > { %5148 = sst [smem:[#allocation13_spill]] %s4147_s24  ;;  %s177_s26 = sand.u32 1, %s4026_s17  }
  0x36   : > { %p4151_p12 = por %p5149_p11, %p37_p2  ;;  %s2535_s5 = sshll.u32 %s4030_s18, 12 }
  0x37   : > { %s4157_s6 = sshll.u32 %s177_s26, 8  ;;  %s5151_s0 = sld [smem:[#allocation16_spill]] }
  0x38   : > { %s181_s28 = scalar_lea.vmem [#allocation2], %s4157_s6  ;;  %p4165_p10 = pnand %p3828_p6, %p39_p8 }
  0x39   : > { %s188_s29 = sshll.u32 %s181_s28, 4  ;;  %s4174_s14 = scalar_lea.hbm %s5130_s1, %s2535_s5  ;;  %s4169_s29 = int_to_ptr.vmem [resolvable:$true] %s188_s29 }
  0x3a   : > { %s4176_s20 = scalar_lea.sflag [#allocation3], %s177_s26  ;;  %p3898_p0 = pneg %p4165_p10 }
  0x3d   : > { %s4162_s25 = scalar_lea.hbm %s5151_s0, %s2535_s5  ;;  %s3901_s12 = scalar_lea.hbm %s5151_s0, 16384 }
  0x3e   : > { %s3896_s7 = scalar_lea.hbm %s4162_s25, 4096  ;;  %p3902_p7 = scmp.lt.u32.totalorder %s4162_s25, %s5151_s0 }
  0x3f   : > { %p3897_p13 = scmp.ne.s32.totalorder %s4162_s25, %s3896_s7  ;;  %p3903_p9 = scmp.lt.u32.totalorder %s3901_s12, %s3896_s7 }
  0x40   : > { %p3905_p2 = scmp.lt.u32.totalorder %s3896_s7, %s4162_s25 }
  0x41   : > { %p3899_p3 = pnand %p3898_p0, %p3897_p13  ;;  %p3904_p1 = por %p3903_p9, %p3902_p7 }
  0x43   : > { %p3900_p5 = pneg %p3899_p3  ;;  %p3906_p4 = por %p3905_p2, %p3904_p1 }
  0x45   : > { %p3907_p6 = pnand %p3906_p4, %p3900_p5 }
  0x47   : > { %3910 = shalt.err (!%p3907_p6)
}
  0x48   : > { %s3911_s26 = scalar_lea.vmem %s4169_s29, 4096  ;;  %s4035_s5 = smov [#allocation2]  }
  0x49   : > { %p3912_p8 = scmp.ne.s32.totalorder %s4169_s29, %s3911_s26  ;;  %s3916_s10 = sshll.u32 %s4035_s5, 4  ;;  %s3917_s10 = int_to_ptr.vmem [resolvable:$false] %s3916_s10 }
  0x4a   : > { %s3918_s2 = scalar_lea.vmem %s3917_s10, 8192  ;;  %p3919_p3 = scmp.lt.s32.totalorder %s4169_s29, %s3917_s10 }
  0x4b   : > { %p3914_p11 = pnand %p3912_p8, %p3898_p0  ;;  %p3920_p7 = scmp.lt.s32.totalorder %s3918_s2, %s3911_s26 }
  0x4d   : > { %p3915_p13 = pneg %p3914_p11  ;;  %p3921_p9 = por %p3920_p7, %p3919_p3 }
  0x4f   : > { %p3922_p1 = pnand %p3921_p9, %p3915_p13 }
  0x51   : > { %3925 = shalt.err (!%p3922_p1)
}
  0x52   : > { %s5153_s12 = smov 8   ;;  %s5154_s13 = smov 128  }
  0x53   : > { %3819 = dma.hbm_to_vmem [thread:$0]  (!%p4165_p10), %s4162_s25, 4096, %s4169_s29, %s4176_s20, %s5154_s13, %s5154_s13, %s5153_s12  }
  0x54   : > { %s202_s11 = scalar_lea.vmem [#allocation5], %s4157_s6  ;;  %s198_s8 = sand.u32 1, %s4030_s18  }
  0x55   : > { %s209_s7 = sshll.u32 %s202_s11, 4  ;;  %s4211_s28 = scalar_lea.sflag [#allocation6], %s198_s8  ;;  %s4209_s7 = int_to_ptr.vmem [resolvable:$true] %s209_s7 }
  0x56   : > { %s3926_s26 = scalar_lea.hbm %s4174_s14, 4096  ;;  %s3931_s2 = scalar_lea.hbm %s5130_s1, 16384 }
  0x57   : > { %p3927_p5 = scmp.ne.s32.totalorder %s4174_s14, %s3926_s26  ;;  %p3932_p6 = scmp.lt.u32.totalorder %s4174_s14, %s5130_s1 }
  0x58   : > { %p3933_p8 = scmp.lt.u32.totalorder %s3931_s2, %s3926_s26  ;;  %p3935_p13 = scmp.lt.u32.totalorder %s3926_s26, %s4174_s14 }
  0x59   : > { %p3929_p2 = pnand %p3927_p5, %p3898_p0 }
  0x5a   : > { %p3934_p11 = por %p3933_p8, %p3932_p6 }
  0x5b   : > { %p3930_p4 = pneg %p3929_p2 }
  0x5c   : > { %p3936_p3 = por %p3935_p13, %p3934_p11 }
  0x5e   : > { %p3937_p7 = pnand %p3936_p3, %p3930_p4 }
  0x60   : > { %3940 = shalt.err (!%p3937_p7)
}
  0x61   : > { %s3941_s6 = scalar_lea.vmem %s4209_s7, 4096  ;;  %s4036_s25 = smov [#allocation5]  }
  0x62   : > { %p3942_p9 = scmp.ne.s32.totalorder %s4209_s7, %s3941_s6  ;;  %s3946_s29 = sshll.u32 %s4036_s25, 4  ;;  %s3947_s29 = int_to_ptr.vmem [resolvable:$false] %s3946_s29 }
  0x63   : > { %s3948_s0 = scalar_lea.vmem %s3947_s29, 8192  ;;  %p3949_p2 = scmp.lt.s32.totalorder %s4209_s7, %s3947_s29 }
  0x64   : > { %p3944_p1 = pnand %p3942_p9, %p3898_p0  ;;  %p3950_p6 = scmp.lt.s32.totalorder %s3948_s0, %s3941_s6 }
  0x66   : > { %p3945_p5 = pneg %p3944_p1  ;;  %p3951_p8 = por %p3950_p6, %p3949_p2 }
  0x68   : > { %p3952_p11 = pnand %p3951_p8, %p3945_p5 }
  0x6a   : > { %3955 = shalt.err (!%p3952_p11)
}
  0x6b   : > { %3822 = dma.hbm_to_vmem [thread:$0]  (!%p4165_p10), %s4174_s14, 4096, %s4209_s7, %s4211_s28, %s5154_s13, %s5154_s13, %s5153_s12  }
  0x6c   : > { %p5155_p0 = scmp.ne.s32.totalorder %s5145_s23, 0 }
  0x6e   : > { %221 = sbr.rel (%p5155_p0) target bundleno = 1574 (0x626), region = 36 }
  0x75   : > { %s4243_s24 = sand.u32 1, %s4022_s16   ;;  %p5156_p4 = scmp.ne.s32.totalorder %s5143_s21, 0 }
  0x76   : > { %s4246_s20 = sshll.u32 %s4243_s24, 8  ;;  %s224_s9 = scalar_lea.sflag [#allocation3], %s4243_s24 }
  0x77   : > { %s4250_s11 = scalar_lea.vmem [#allocation2], %s4246_s20 }
  0x78   : > { %4001 = dma.done.wait (%p5156_p4), %s224_s9, 4096  }
  0x79   : > { %4003 = vsyncadd (%p5156_p4), %s224_s9, 4294963200  ;;  %s232_s23 = sand.u32 1, %s4086_s19   ;;  %s4258_s12 = scalar_lea.vmem [#allocation5], %s4246_s20 }
  0x7a   : > { %s233_s14 = scalar_lea.sflag [#allocation6], %s232_s23 }
  0x7b   : > { %4005 = dma.done.wait (%p5156_p4), %s233_s14, 4096  }
  0x7c   : > { %4007 = vsyncadd (%p5156_p4), %s233_s14, 4294963200  ;;  %p5157_p10 = scmp.eq.s32.totalorder %s4086_s19, 0 }
  0x7e   : > { %4009 = dma.done.wait (%p5157_p10), [#allocation6], 14336   ;;  %p5158_p13 = pmov %p5157_p10 }
  0x7f   : > { %v305_v0 = vld [vmem:[#allocation7] sm:$0xff]  ;;  %v306_v1 = vld [vmem:[#allocation7 + $0x8] sm:$0xff]  ;;  %v307_v2 = vld [vmem:[#allocation7 + $0x10] sm:$0xff]  ;;  %s4981_s14 = scalar_lea.vmem [#allocation8], %s4246_s20  ;;  %s2537_s20 = sshll.u32 %s4086_s19, 12 }
  0x80   : > { %4011 = vsyncadd (%p5158_p13), [#allocation6], 4294952960  ;;  %v3434_v3 = vpack.c.bf16 %v306_v1, %v305_v0  ;;  %v308_v4 = vld [vmem:[#allocation7 + $0x18] sm:$0xff]  ;;  %v309_v6 = vld [vmem:[#allocation7 + $0x20] sm:$0xff]  ;;  %s5082_s7 = scalar_lea.hbm %s5133_s4, %s2537_s20  ;;  %s2382_s19 = scalar_lea.sflag [#allocation4], %s4243_s24 }
  0x81   : > { %v3438_v5 = vpack.c.bf16 %v308_v4, %v307_v2  ;;  %v310_v7 = vld [vmem:[#allocation7 + $0x28] sm:$0xff]  ;;  %v289_v9 = vld [vmem:[%s4250_s11 + $0x80] sm:$0xff]  ;;  %v311_v10 = vld [vmem:[#allocation7 + $0x30] sm:$0xff]  ;;  %s4037_s28 = smov [#allocation8]  }
  0x82   : > { %3658 = vmatprep.subr.bf16.mxu1 %v3434_v3  ;;  %3435 = vmatprep.subr.bf16.mxu0 %v3434_v3  ;;  %v3442_v8 = vpack.c.bf16 %v310_v7, %v309_v6  ;;  %v312_v11 = vld [vmem:[#allocation7 + $0x38] sm:$0xff]  ;;  %v313_v13 = vld [vmem:[#allocation7 + $0x40] sm:$0xff]  ;;  %v314_v14 = vld [vmem:[#allocation7 + $0x48] sm:$0xff]  ;;  %s3960_s26 = sshll.u32 %s4037_s28, 4  ;;  %s3961_s26 = int_to_ptr.vmem [resolvable:$false] %s3960_s26 }
  0x83   : > { %3666 = vmatpush3.bf16.msra.mxu1 %v3434_v3  ;;  %3437 = vmatpush3.bf16.msra.mxu0 %v3434_v3  ;;  %v3446_v12 = vpack.c.bf16 %v312_v11, %v311_v10  ;;  %v3450_v15 = vpack.c.bf16 %v314_v14, %v313_v13  ;;  %v315_v16 = vld [vmem:[#allocation7 + $0x50] sm:$0xff]  ;;  %v316_v17 = vld [vmem:[#allocation7 + $0x58] sm:$0xff]  ;;  %v317_v19 = vld [vmem:[#allocation7 + $0x60] sm:$0xff]  ;;  %s3962_s5 = scalar_lea.vmem %s3961_s26, 8192 }
  0x84   : > { %3659 = vmatprep.subr.bf16.mxu1 %v3438_v5  ;;  %3439 = vmatprep.subr.bf16.mxu0 %v3438_v5  ;;  %v3454_v18 = vpack.c.bf16 %v316_v17, %v315_v16  ;;  %v318_v20 = vld [vmem:[#allocation7 + $0x68] sm:$0xff]  ;;  %v319_v22 = vld [vmem:[#allocation7 + $0x70] sm:$0xff]  ;;  %v320_v23 = vld [vmem:[#allocation7 + $0x78] sm:$0xff] }
  0x85   : > { %2930 = vmatprep.mubr.f32.mxu1 %v289_v9  ;;  %v3458_v21 = vpack.c.bf16 %v318_v20, %v317_v19  ;;  %v3462_v24 = vpack.c.bf16 %v320_v23, %v319_v22  ;;  %v626_v25 = vld [vmem:[#allocation7 + $0x80] sm:$0xff]  ;;  %v627_v26 = vld [vmem:[#allocation7 + $0x88] sm:$0xff]  ;;  %v628_v28 = vld [vmem:[#allocation7 + $0x90] sm:$0xff] }
  0x86   : > { %v3466_v27 = vpack.c.bf16 %v627_v26, %v626_v25  ;;  %v629_v29 = vld [vmem:[#allocation7 + $0x98] sm:$0xff]  ;;  %v290_v30 = vld [vmem:[%s4250_s11 + $0x88] sm:$0xff]  ;;  %v291_v31 = vld [vmem:[%s4250_s11 + $0x90] sm:$0xff] }
  0x87   : > { %3667 = vmatpush3.bf16.msra.mxu1 %v3438_v5  ;;  %3441 = vmatpush3.bf16.msra.mxu0 %v3438_v5  ;;  %v3470_v32 = vpack.c.bf16 %v629_v29, %v628_v28  ;;  %v630_v33 = vld [vmem:[#allocation7 + $0xa0] sm:$0xff]  ;;  %v631_v34 = vld [vmem:[#allocation7 + $0xa8] sm:$0xff]  ;;  %v292_v35 = vld [vmem:[%s4250_s11 + $0x98] sm:$0xff] }
  0x88   : > { %3660 = vmatprep.subr.bf16.mxu1 %v3442_v8  ;;  %3443 = vmatprep.subr.bf16.mxu0 %v3442_v8  ;;  %v293_v36 = vld [vmem:[%s4250_s11 + $0xa0] sm:$0xff]  ;;  %v3474_v37 = vpack.c.bf16 %v631_v34, %v630_v33  ;;  %v632_v38 = vld [vmem:[#allocation7 + $0xb0] sm:$0xff]  ;;  %v633_v39 = vld [vmem:[#allocation7 + $0xb8] sm:$0xff] }
  0x89   : > { %v294_v40 = vld [vmem:[%s4250_s11 + $0xa8] sm:$0xff]  ;;  %v295_v41 = vld [vmem:[%s4250_s11 + $0xb0] sm:$0xff]  ;;  %v3478_v42 = vpack.c.bf16 %v633_v39, %v632_v38  ;;  %v634_v43 = vld [vmem:[#allocation7 + $0xc0] sm:$0xff] }
  0x8a   : > { %v635_v44 = vld [vmem:[#allocation7 + $0xc8] sm:$0xff]  ;;  %v296_v45 = vld [vmem:[%s4250_s11 + $0xb8] sm:$0xff]  ;;  %v297_v46 = vld [vmem:[%s4250_s11 + $0xc0] sm:$0xff] }
  0x8b   : > { %3668 = vmatpush3.bf16.msra.mxu1 %v3442_v8  ;;  %3445 = vmatpush3.bf16.msra.mxu0 %v3442_v8  ;;  %v3482_v47 = vpack.c.bf16 %v635_v44, %v634_v43  ;;  %v636_v48 = vld [vmem:[#allocation7 + $0xd0] sm:$0xff]  ;;  %v637_v49 = vld [vmem:[#allocation7 + $0xd8] sm:$0xff]  ;;  %v298_v50 = vld [vmem:[%s4250_s11 + $0xc8] sm:$0xff] }
  0x8c   : > { %3661 = vmatprep.subr.bf16.mxu1 %v3446_v12  ;;  %3447 = vmatprep.subr.bf16.mxu0 %v3446_v12  ;;  %v299_v51 = vld [vmem:[%s4250_s11 + $0xd0] sm:$0xff]  ;;  %v3486_v52 = vpack.c.bf16 %v637_v49, %v636_v48  ;;  %v638_v53 = vld [vmem:[#allocation7 + $0xe0] sm:$0xff]  ;;  %v639_v54 = vld [vmem:[#allocation7 + $0xe8] sm:$0xff] }
  0x8d   : > { %v300_v55 = vld [vmem:[%s4250_s11 + $0xd8] sm:$0xff]  ;;  %v301_v56 = vld [vmem:[%s4250_s11 + $0xe0] sm:$0xff]  ;;  %v3490_v57 = vpack.c.bf16 %v639_v54, %v638_v53  ;;  %v640_v58 = vld [vmem:[#allocation7 + $0xf0] sm:$0xff] }
  0x8e   : > { %v641_v59 = vld [vmem:[#allocation7 + $0xf8] sm:$0xff]  ;;  %v302_v60 = vld [vmem:[%s4250_s11 + $0xe8] sm:$0xff]  ;;  %v303_v61 = vld [vmem:[%s4250_s11 + $0xf0] sm:$0xff] }
  0x8f   : > { %3669 = vmatpush3.bf16.msra.mxu1 %v3446_v12  ;;  %3449 = vmatpush3.bf16.msra.mxu0 %v3446_v12  ;;  %v3494_v62 = vpack.c.bf16 %v641_v59, %v640_v58  ;;  %v553_v63 = vld [vmem:[%s4258_s12] sm:$0xff]  ;;  %v304_v1 = vld [vmem:[%s4250_s11 + $0xf8] sm:$0xff]  ;;  %v554_v3 = vld [vmem:[%s4258_s12 + $0x8] sm:$0xff] }
  0x90   : > { %3662 = vmatprep.subr.bf16.mxu1 %v3450_v15  ;;  %3451 = vmatprep.subr.bf16.mxu0 %v3450_v15  ;;  %v4287_v0 = vld [vmem:[%s5132_s3 + $0x1] ss:$0 sm:$0xff]  ;;  %v555_v4 = vld [vmem:[%s4258_s12 + $0x10] sm:$0xff]  ;;  %v556_v7 = vld [vmem:[%s4258_s12 + $0x18] sm:$0xff] }
  0x91   : > { %v4291_v2 = vmul.f32 %v4287_v0, %v553_v63  ;;  %v4296_v5 = vmul.f32 %v4287_v0, %v554_v3  ;;  %v4300_v6 = vmul.f32 %v4287_v0, %v555_v4  ;;  %v557_v8 = vld [vmem:[%s4258_s12 + $0x20] sm:$0xff]  ;;  %v4306_v9 = vmul.f32 %v4287_v0, %v556_v7  ;;  %v558_v11 = vld [vmem:[%s4258_s12 + $0x28] sm:$0xff]  ;;  %v559_v12 = vld [vmem:[%s4258_s12 + $0x30] sm:$0xff] }
  0x92   : > { %v4310_v10 = vmul.f32 %v4287_v0, %v557_v8  ;;  %v4316_v13 = vmul.f32 %v4287_v0, %v558_v11  ;;  %v4320_v14 = vmul.f32 %v4287_v0, %v559_v12  ;;  %v561_v16 = vld [vmem:[%s4258_s12 + $0x40] sm:$0xff]  ;;  %v562_v19 = vld [vmem:[%s4258_s12 + $0x48] sm:$0xff]  ;;  %v563_v20 = vld [vmem:[%s4258_s12 + $0x50] sm:$0xff] }
  0x93   : > { %3670 = vmatpush3.bf16.msra.mxu1 %v3450_v15  ;;  %3453 = vmatpush3.bf16.msra.mxu0 %v3450_v15  ;;  %v560_v15 = vld [vmem:[%s4258_s12 + $0x38] sm:$0xff]  ;;  %v4340_v22 = vmul.f32 %v4287_v0, %v563_v20  ;;  %v567_v28 = vld [vmem:[%s4258_s12 + $0x70] sm:$0xff]  ;;  %v574_v43 = vld [vmem:[%s4258_s12 + $0xa8] sm:$0xff] }
  0x94   : > { %3663 = vmatprep.subr.bf16.mxu1 %v3454_v18  ;;  %3455 = vmatprep.subr.bf16.mxu0 %v3454_v18  ;;  %v4326_v17 = vmul.f32 %v4287_v0, %v560_v15  ;;  %v564_v23 = vld [vmem:[%s4258_s12 + $0x58] sm:$0xff]  ;;  %v575_v44 = vld [vmem:[%s4258_s12 + $0xb0] sm:$0xff]  ;;  %v577_v48 = vld [vmem:[%s4258_s12 + $0xc0] sm:$0xff] }
  0x95   : > { %v4346_v25 = vmul.f32 %v4287_v0, %v564_v23  ;;  %v572_v39 = vld [vmem:[%s4258_s12 + $0x98] sm:$0xff]  ;;  %v582_v59 = vld [vmem:[%s4258_s12 + $0xe8] sm:$0xff]  ;;  %v273_v7 = vld [vmem:[%s4250_s11] sm:$0xff] }
  0x96   : > { %v584_v63 = vld [vmem:[%s4258_s12 + $0xf8] sm:$0xff]  ;;  %v909_v3 = vld [vmem:[#allocation7 + $0x208] sm:$0xff]  ;;  %2906 = vmatprep.mubr.f32.mxu0 %v273_v7  ;;  %v910_v12 = vld [vmem:[#allocation7 + $0x210] sm:$0xff] }
  0x97   : > { %3671 = vmatpush3.bf16.msra.mxu1 %v3454_v18  ;;  %3457 = vmatpush3.bf16.msra.mxu0 %v3454_v18  ;;  %v4330_v18 = vmul.f32 %v4287_v0, %v561_v16  ;;  %v4445_v4 = vmul.f32 %v4287_v0, %v584_v63  ;;  %v274_v11 = vld [vmem:[%s4250_s11 + $0x8] sm:$0xff]  ;;  %v911_v15 = vld [vmem:[#allocation7 + $0x218] sm:$0xff]  ;;  %v275_v16 = vld [vmem:[%s4250_s11 + $0x10] sm:$0xff] }
  0x98   : > { %3664 = vmatprep.subr.bf16.mxu1 %v3458_v21  ;;  %3459 = vmatprep.subr.bf16.mxu0 %v3458_v21  ;;  %v912_v20 = vld [vmem:[#allocation7 + $0x220] sm:$0xff]  ;;  %v913_v23 = vld [vmem:[#allocation7 + $0x228] sm:$0xff] }
  0x99   : > { %v921_v63 = vld [vmem:[#allocation7 + $0x268] sm:$0xff] }
  0x9a   : > { %v286_v7 = vld [vmem:[%s4250_s11 + $0x68] sm:$0xff] }
  0x9b   : > { %3672 = vmatpush3.bf16.msra.mxu1 %v3458_v21  ;;  %3461 = vmatpush3.bf16.msra.mxu0 %v3458_v21  ;;  %v4336_v21 = vmul.f32 %v4287_v0, %v562_v19  ;;  %v3502_v19 = vpack.c.bf16 %v911_v15, %v910_v12  ;;  %v287_v12 = vld [vmem:[%s4250_s11 + $0x70] sm:$0xff] }
  0x9c   : > { %3665 = vmatprep.subr.bf16.mxu1 %v3462_v24  ;;  %3463 = vmatprep.subr.bf16.mxu0 %v3462_v24 }
  0x9f   : > { %3673 = vmatpush3.bf16.msra.mxu1 %v3462_v24  ;;  %3465 = vmatpush3.bf16.msra.mxu0 %v3462_v24  ;;  %v565_v24 = vld [vmem:[%s4258_s12 + $0x60] sm:$0xff] }
  0xa0   : > { %3467 = vmatprep.subr.bf16.mxu1 %v3466_v27  ;;  %v4350_v26 = vmul.f32 %v4287_v0, %v565_v24  ;;  %v277_v24 = vld [vmem:[%s4250_s11 + $0x20] sm:$0xff] }
  0xa2   : > { %2931 = vmatmul.mubr.f32.vlgmr.msra.gmra.mrb[0].mxu1 %v290_v30  ;;  %v4360_v30 = vmul.f32 %v4287_v0, %v567_v28  ;;  %2907 = vmatmul.mubr.f32.vlgmr.msra.gmra.mrb[0].mxu0 %v274_v11  ;;  %v278_v28 = vld [vmem:[%s4250_s11 + $0x28] sm:$0xff]  ;;  %v923_v11 = vld [vmem:[#allocation7 + $0x278] sm:$0xff] }
  0xa3   : > { %3469 = vmatpush3.bf16.msra.mxu1 %v3466_v27  ;;  %2933 = vmatprep.mubr.f32.mxu1 %v291_v31  ;;  %v566_v27 = vld [vmem:[%s4258_s12 + $0x68] sm:$0xff]  ;;  %v568_v31 = vld [vmem:[%s4258_s12 + $0x78] sm:$0xff] }
  0xa4   : > { %3471 = vmatprep.subr.bf16.mxu1 %v3470_v32  ;;  %v4356_v29 = vmul.f32 %v4287_v0, %v566_v27  ;;  %v4366_v33 = vmul.f32 %v4287_v0, %v568_v31  ;;  %2909 = vmatprep.mubr.f32.mxu0 %v275_v16  ;;  %v3506_v27 = vpack.c.bf16 %v913_v23, %v912_v20  ;;  %v914_v31 = vld [vmem:[#allocation7 + $0x230] sm:$0xff]  ;;  %v288_v16 = vld [vmem:[%s4250_s11 + $0x78] sm:$0xff] }
  0xa5   : > { %v1192_v20 = vld [vmem:[#allocation7 + $0x110] sm:$0xff] }
  0xa6   : > { %2934 = vmatmul.mubr.f32.gmra.mrb[2].mxu1 %v292_v35  ;;  %v570_v35 = vld [vmem:[%s4258_s12 + $0x88] sm:$0xff] }
  0xa7   : > { %3473 = vmatpush3.bf16.msra.mxu1 %v3470_v32  ;;  %2936 = vmatprep.mubr.f32.mxu1 %v293_v36  ;;  %v569_v32 = vld [vmem:[%s4258_s12 + $0x80] sm:$0xff]  ;;  %v571_v36 = vld [vmem:[%s4258_s12 + $0x90] sm:$0xff] }
  0xa8   : > { %3475 = vmatprep.subr.bf16.mxu1 %v3474_v37  ;;  %v4370_v34 = vmul.f32 %v4287_v0, %v569_v32  ;;  %v4380_v38 = vmul.f32 %v4287_v0, %v571_v36  ;;  %v915_v32 = vld [vmem:[#allocation7 + $0x238] sm:$0xff] }
  0xa9   : > { %v3510_v36 = vpack.c.bf16 %v915_v32, %v914_v31  ;;  %v1195_v31 = vld [vmem:[#allocation7 + $0x128] sm:$0xff] }
  0xaa   : > { %2937 = vmatmul.mubr.f32.gmra.mrb[4].mxu1 %v294_v40  ;;  %v573_v40 = vld [vmem:[%s4258_s12 + $0xa0] sm:$0xff] }
  0xab   : > { %3477 = vmatpush3.bf16.msra.mxu1 %v3474_v37  ;;  %2939 = vmatprep.mubr.f32.mxu1 %v295_v41  ;;  %v4376_v37 = vmul.f32 %v4287_v0, %v570_v35  ;;  %v4386_v41 = vmul.f32 %v4287_v0, %v572_v39  ;;  %v279_v35 = vld [vmem:[%s4250_s11 + $0x30] sm:$0xff]  ;;  %v280_v39 = vld [vmem:[%s4250_s11 + $0x38] sm:$0xff] }
  0xac   : > { %3479 = vmatprep.subr.bf16.mxu1 %v3478_v42 }
  0xae   : > { %2940 = vmatmul.mubr.f32.gmra.mrb[6].mxu1 %v296_v45  ;;  %v4396_v45 = vmul.f32 %v4287_v0, %v574_v43  ;;  %v917_v43 = vld [vmem:[#allocation7 + $0x248] sm:$0xff] }
  0xaf   : > { %3481 = vmatpush3.bf16.msra.mxu1 %v3478_v42  ;;  %2942 = vmatprep.mubr.f32.mxu1 %v297_v46  ;;  %v4390_v42 = vmul.f32 %v4287_v0, %v573_v40  ;;  %v4400_v46 = vmul.f32 %v4287_v0, %v575_v44  ;;  %v916_v40 = vld [vmem:[#allocation7 + $0x240] sm:$0xff] }
  0xb0   : > { %3483 = vmatprep.subr.bf16.mxu1 %v3482_v47  ;;  %v281_v44 = vld [vmem:[%s4250_s11 + $0x40] sm:$0xff] }
  0xb2   : > { %2943 = vmatmul.mubr.f32.gmra.mrb[8].mxu1 %v298_v50  ;;  %v4410_v50 = vmul.f32 %v4287_v0, %v577_v48  ;;  %v282_v48 = vld [vmem:[%s4250_s11 + $0x48] sm:$0xff] }
  0xb3   : > { %3485 = vmatpush3.bf16.msra.mxu1 %v3482_v47  ;;  %2945 = vmatprep.mubr.f32.mxu1 %v299_v51  ;;  %v576_v47 = vld [vmem:[%s4258_s12 + $0xb8] sm:$0xff]  ;;  %v578_v51 = vld [vmem:[%s4258_s12 + $0xc8] sm:$0xff] }
  0xb4   : > { %3487 = vmatprep.subr.bf16.mxu1 %v3486_v52  ;;  %v4406_v49 = vmul.f32 %v4287_v0, %v576_v47  ;;  %v4416_v53 = vmul.f32 %v4287_v0, %v578_v51  ;;  %v3514_v47 = vpack.c.bf16 %v917_v43, %v916_v40  ;;  %v918_v51 = vld [vmem:[#allocation7 + $0x250] sm:$0xff]  ;;  %v1198_v40 = vld [vmem:[#allocation7 + $0x140] sm:$0xff]  ;;  %v1199_v43 = vld [vmem:[#allocation7 + $0x148] sm:$0xff] }
  0xb6   : > { %2946 = vmatmul.mubr.f32.gmra.mrb[10].mxu1 %v300_v55  ;;  %v580_v55 = vld [vmem:[%s4258_s12 + $0xd8] sm:$0xff] }
  0xb7   : > { %3489 = vmatpush3.bf16.msra.mxu1 %v3486_v52  ;;  %2948 = vmatprep.mubr.f32.mxu1 %v301_v56  ;;  %v579_v52 = vld [vmem:[%s4258_s12 + $0xd0] sm:$0xff]  ;;  %v581_v56 = vld [vmem:[%s4258_s12 + $0xe0] sm:$0xff] }
  0xb8   : > { %3491 = vmatprep.subr.bf16.mxu1 %v3490_v57  ;;  %v4420_v54 = vmul.f32 %v4287_v0, %v579_v52  ;;  %v4430_v58 = vmul.f32 %v4287_v0, %v581_v56  ;;  %v919_v52 = vld [vmem:[#allocation7 + $0x258] sm:$0xff] }
  0xb9   : > { %v3518_v56 = vpack.c.bf16 %v919_v52, %v918_v51  ;;  %v1202_v52 = vld [vmem:[#allocation7 + $0x160] sm:$0xff] }
  0xba   : > { %2949 = vmatmul.mubr.f32.gmra.mrb[12].mxu1 %v302_v60  ;;  %v583_v60 = vld [vmem:[%s4258_s12 + $0xf0] sm:$0xff]  ;;  %s2395_s12 = sshll.u32 %s4981_s14, 4  ;;  %s5084_s12 = int_to_ptr.vmem [resolvable:$true] %s2395_s12 }
  0xbb   : > { %3493 = vmatpush3.bf16.msra.mxu1 %v3490_v57  ;;  %2951 = vmatprep.mubr.f32.mxu1 %v303_v61  ;;  %v4426_v57 = vmul.f32 %v4287_v0, %v580_v55  ;;  %v4436_v61 = vmul.f32 %v4287_v0, %v582_v59  ;;  %v283_v55 = vld [vmem:[%s4250_s11 + $0x50] sm:$0xff]  ;;  %v284_v59 = vld [vmem:[%s4250_s11 + $0x58] sm:$0xff]  ;;  %s3956_s8 = scalar_lea.vmem %s5084_s12, 4096  ;;  %p3963_p1 = scmp.lt.s32.totalorder %s5084_s12, %s3961_s26 }
  0xbc   : > { %3495 = vmatprep.subr.bf16.mxu1 %v3494_v62  ;;  %p3957_p3 = scmp.ne.s32.totalorder %s5084_s12, %s3956_s8  ;;  %p3964_p5 = scmp.lt.s32.totalorder %s3962_s5, %s3956_s8 }
  0xbe   : > { %2952 = vmatmul.mubr.f32.gmra.mrb[14].mxu1 %v304_v1  ;;  %v908_v1 = vld [vmem:[#allocation7 + $0x200] sm:$0xff]  ;;  %p3958_p7 = pnand %p3957_p3, %p4151_p12  ;;  %p3965_p2 = por %p3964_p5, %p3963_p1 }
  0xbf   : > { %3497 = vmatpush3.bf16.msra.mxu1 %v3494_v62  ;;  %2986 = vmatprep.mubr.f32.mxu1 %v4291_v2  ;;  %v4440_v62 = vmul.f32 %v4287_v0, %v583_v60  ;;  %v3498_v8 = vpack.c.bf16 %v909_v3, %v908_v1  ;;  %v276_v0 = vld [vmem:[%s4250_s11 + $0x18] sm:$0xff]  ;;  %v920_v60 = vld [vmem:[#allocation7 + $0x260] sm:$0xff] }
  0xc0   : > { %2910 = vmatmul.mubr.f32.gmra.mrb[2].mxu0 %v276_v0  ;;  %v285_v1 = vld [vmem:[%s4250_s11 + $0x60] sm:$0xff]  ;;  %v3522_v3 = vpack.c.bf16 %v921_v63, %v920_v60  ;;  %v1191_v0 = vld [vmem:[#allocation7 + $0x108] sm:$0xff]  ;;  %v1205_v60 = vld [vmem:[#allocation7 + $0x178] sm:$0xff]  ;;  %p3959_p9 = pneg %p3958_p7 }
  0xc1   : > { %3499 = vmatprep.subr.bf16.mxu0 %v3498_v8  ;;  %2912 = vmatprep.mubr.f32.mxu0 %v277_v24  ;;  %v1193_v24 = vld [vmem:[#allocation7 + $0x118] sm:$0xff] }
  0xc2   : > { %2987 = vmatmul.mubr.f32.vlgmr.msra.gmra.mrb[16].mxu1 %v4296_v5  ;;  %3501 = vmatpush3.bf16.msra.mxu0 %v3498_v8  ;;  %v922_v8 = vld [vmem:[#allocation7 + $0x270] sm:$0xff]  ;;  %p3966_p6 = pnand %p3965_p2, %p3959_p9 }
  0xc3   : > { %2989 = vmatprep.mubr.f32.mxu1 %v4300_v6  ;;  %3503 = vmatprep.subr.bf16.mxu0 %v3502_v19  ;;  %v3526_v15 = vpack.c.bf16 %v923_v11, %v922_v8 }
  0xc4   : > { %2913 = vmatmul.mubr.f32.gmra.mrb[4].mxu0 %v278_v28  ;;  %v1194_v28 = vld [vmem:[#allocation7 + $0x120] sm:$0xff] }
  0xc5   : > { %2915 = vmatprep.mubr.f32.mxu0 %v279_v35  ;;  %v3538_v32 = vpack.c.bf16 %v1195_v31, %v1194_v28  ;;  %v1196_v35 = vld [vmem:[#allocation7 + $0x130] sm:$0xff] }
  0xc6   : > { %2990 = vmatmul.mubr.f32.gmra.mrb[18].mxu1 %v4306_v9  ;;  %3505 = vmatpush3.bf16.msra.mxu0 %v3502_v19  ;;  %v1190_v19 = vld [vmem:[#allocation7 + $0x100] sm:$0xff] }
  0xc7   : > { %2992 = vmatprep.mubr.f32.mxu1 %v4310_v10  ;;  %3507 = vmatprep.subr.bf16.mxu0 %v3506_v27  ;;  %v3530_v23 = vpack.c.bf16 %v1191_v0, %v1190_v19 }
  0xc8   : > { %2916 = vmatmul.mubr.f32.gmra.mrb[6].mxu0 %v280_v39 }
  0xc9   : > { %2918 = vmatprep.mubr.f32.mxu0 %v281_v44  ;;  %3531 = vmatprep.subr.bf16.mxu1 %v3530_v23  ;;  %v3546_v44 = vpack.c.bf16 %v1199_v43, %v1198_v40 }
  0xca   : > { %2993 = vmatmul.mubr.f32.gmra.mrb[20].mxu1 %v4316_v13  ;;  %3509 = vmatpush3.bf16.msra.mxu0 %v3506_v27  ;;  %v3534_v27 = vpack.c.bf16 %v1193_v24, %v1192_v20 }
  0xcb   : > { %2995 = vmatprep.mubr.f32.mxu1 %v4320_v14  ;;  %3511 = vmatprep.subr.bf16.mxu0 %v3510_v36 }
  0xcc   : > { %2919 = vmatmul.mubr.f32.gmra.mrb[8].mxu0 %v282_v48  ;;  %3533 = vmatpush3.bf16.msra.mxu1 %v3530_v23  ;;  %v1201_v48 = vld [vmem:[#allocation7 + $0x158] sm:$0xff] }
  0xcd   : > { %2921 = vmatprep.mubr.f32.mxu0 %v283_v55  ;;  %3535 = vmatprep.subr.bf16.mxu1 %v3534_v27  ;;  %v1203_v55 = vld [vmem:[#allocation7 + $0x168] sm:$0xff] }
  0xce   : > { %2996 = vmatmul.mubr.f32.gmra.mrb[22].mxu1 %v4326_v17  ;;  %3513 = vmatpush3.bf16.msra.mxu0 %v3510_v36  ;;  %v1197_v36 = vld [vmem:[#allocation7 + $0x138] sm:$0xff] }
  0xcf   : > { %2998 = vmatprep.mubr.f32.mxu1 %v4330_v18  ;;  %3515 = vmatprep.subr.bf16.mxu0 %v3514_v47  ;;  %v3542_v39 = vpack.c.bf16 %v1197_v36, %v1196_v35 }
  0xd0   : > { %2922 = vmatmul.mubr.f32.gmra.mrb[10].mxu0 %v284_v59  ;;  %3537 = vmatpush3.bf16.msra.mxu1 %v3534_v27  ;;  %v1204_v59 = vld [vmem:[#allocation7 + $0x170] sm:$0xff] }
  0xd1   : > { %2924 = vmatprep.mubr.f32.mxu0 %v285_v1  ;;  %3539 = vmatprep.subr.bf16.mxu1 %v3538_v32  ;;  %v3558_v63 = vpack.c.bf16 %v1205_v60, %v1204_v59 }
  0xd2   : > { %2999 = vmatmul.mubr.f32.gmra.mrb[24].mxu1 %v4336_v21  ;;  %3517 = vmatpush3.bf16.msra.mxu0 %v3514_v47  ;;  %v1200_v47 = vld [vmem:[#allocation7 + $0x150] sm:$0xff] }
  0xd3   : > { %3001 = vmatprep.mubr.f32.mxu1 %v4340_v22  ;;  %3519 = vmatprep.subr.bf16.mxu0 %v3518_v56  ;;  %v3550_v51 = vpack.c.bf16 %v1201_v48, %v1200_v47 }
  0xd4   : > { %2925 = vmatmul.mubr.f32.gmra.mrb[12].mxu0 %v286_v7  ;;  %3541 = vmatpush3.bf16.msra.mxu1 %v3538_v32  ;;  %v4500_v32 = vld [vmem:[%s5132_s3 + $0x2] ss:$0 sm:$0xff] }
  0xd5   : > { %2927 = vmatprep.mubr.f32.mxu0 %v287_v12  ;;  %3543 = vmatprep.subr.bf16.mxu1 %v3542_v39 }
  0xd6   : > { %3002 = vmatmul.mubr.f32.gmra.mrb[26].mxu1 %v4346_v25  ;;  %3521 = vmatpush3.bf16.msra.mxu0 %v3518_v56  ;;  %v3554_v56 = vpack.c.bf16 %v1203_v55, %v1202_v52 }
  0xd7   : > { %3004 = vmatprep.mubr.f32.mxu1 %v4350_v26  ;;  %3523 = vmatprep.subr.bf16.mxu0 %v3522_v3 }
  0xd8   : > { %2928 = vmatmul.mubr.f32.gmra.mrb[14].mxu0 %v288_v16  ;;  %3545 = vmatpush3.bf16.msra.mxu1 %v3542_v39 }
  0xd9   : > { %3547 = vmatprep.subr.bf16.mxu1 %v3546_v44 }
  0xda   : > { %3005 = vmatmul.mubr.f32.gmra.mrb[28].mxu1 %v4356_v29  ;;  %3525 = vmatpush3.bf16.msra.mxu0 %v3522_v3 }
  0xdb   : > { %3007 = vmatprep.mubr.f32.mxu1 %v4360_v30  ;;  %3527 = vmatprep.subr.bf16.mxu0 %v3526_v15 }
  0xdc   : > { %3549 = vmatpush3.bf16.msra.mxu1 %v3546_v44 }
  0xdd   : > { %3551 = vmatprep.subr.bf16.mxu1 %v3550_v51 }
  0xde   : > { %3008 = vmatmul.mubr.f32.gmra.mrb[30].mxu1 %v4366_v33  ;;  %3529 = vmatpush3.bf16.msra.mxu0 %v3526_v15 }
  0xdf   : > { %3010 = vmatprep.mubr.f32.mxu1 %v4370_v34 }
  0xe0   : > { %3553 = vmatpush3.bf16.msra.mxu1 %v3550_v51 }
  0xe1   : > { %3555 = vmatprep.subr.bf16.mxu1 %v3554_v56 }
  0xe2   : > { %3011 = vmatmul.mubr.f32.gmra.mrb[32].mxu1 %v4376_v37 }
  0xe3   : > { %3013 = vmatprep.mubr.f32.mxu1 %v4380_v38 }
  0xe4   : > { %3557 = vmatpush3.bf16.msra.mxu1 %v3554_v56 }
  0xe5   : > { %3559 = vmatprep.subr.bf16.mxu1 %v3558_v63 }
  0xe6   : > { %3014 = vmatmul.mubr.f32.gmra.mrb[34].mxu1 %v4386_v41 }
  0xe7   : > { %3016 = vmatprep.mubr.f32.mxu1 %v4390_v42 }
  0xe8   : > { %3561 = vmatpush3.bf16.msra.mxu1 %v3558_v63 }
  0xea   : > { %3017 = vmatmul.mubr.f32.gmra.mrb[36].mxu1 %v4396_v45 }
  0xeb   : > { %3019 = vmatprep.mubr.f32.mxu1 %v4400_v46 }
  0xee   : > { %3020 = vmatmul.mubr.f32.gmra.mrb[38].mxu1 %v4406_v49 }
  0xef   : > { %3022 = vmatprep.mubr.f32.mxu1 %v4410_v50 }
  0xf2   : > { %3023 = vmatmul.mubr.f32.gmra.mrb[40].mxu1 %v4416_v53 }
  0xf3   : > { %3025 = vmatprep.mubr.f32.mxu1 %v4420_v54 }
  0xf6   : > { %3026 = vmatmul.mubr.f32.gmra.mrb[42].mxu1 %v4426_v57 }
  0xf7   : > { %3028 = vmatprep.mubr.f32.mxu1 %v4430_v58 }
  0xfa   : > { %3029 = vmatmul.mubr.f32.gmra.mrb[44].mxu1 %v4436_v61 }
  0xfb   : > { %3031 = vmatprep.mubr.f32.mxu1 %v4440_v62 }
  0xfe   : > { %3032 = vmatmul.mubr.f32.gmra.mrb[46].mxu1 %v4445_v4 }
 0x175   : > { %v4465_v1 = vpop.f32.mrb[0].mxu1 }
 0x176   : > { %v4467_v3 = vpop.f32.mrb[1].mxu1 }
 0x179   : > { %v4469_v7 = vpop.f32.mrb[2].mxu1 }
 0x17a   : > { %v4471_v8 = vpop.f32.mrb[3].mxu1 }
 0x17d   : > { %v4473_v11 = vpop.f32.mrb[4].mxu1 }
 0x17e   : > { %v4475_v12 = vpop.f32.mrb[5].mxu1 }
 0x181   : > { %v4477_v15 = vpop.f32.mrb[6].mxu1 }
 0x182   : > { %v4479_v16 = vpop.f32.mrb[7].mxu1 }
 0x185   : > { %v4481_v19 = vpop.f32.mrb[8].mxu1 }
 0x186   : > { %v4483_v0 = vpop.f32.mrb[9].mxu1 }
 0x189   : > { %v4485_v20 = vpop.f32.mrb[10].mxu1 }
 0x18a   : > { %v4487_v23 = vpop.f32.mrb[11].mxu1 }
 0x18d   : > { %v4489_v24 = vpop.f32.mrb[12].mxu1 }
 0x18e   : > { %v4491_v27 = vpop.f32.mrb[13].mxu1 }
 0x191   : > { %v4493_v28 = vpop.f32.mrb[14].mxu1 }
 0x192   : > { %5159 = vst [vmem:[#allocation14_spill] sm:$0xff] %v4493_v28  ;;  %v4495_v31 = vpop.f32.mrb[15].mxu1  ;;  %v1477_v28 = vld [vmem:[#allocation7 + $0x2a8] sm:$0xff] }
 0x193   : > { %5160 = vst [vmem:[#allocation15_spill] sm:$0xff] %v4495_v31 }
 0x195   : > { %v2988_v35 = vpop.f32.mrb[16].mxu1 }
 0x196   : > { %v722_v36 = vadd.f32 %v2988_v35, %v4500_v32  ;;  %v716_v39 = vpop.f32.mrb[17].mxu1 }
 0x197   : > { %v717_v40 = vadd.f32 %v4500_v32, %v716_v39 }
 0x198   : > { %v876_v47 = vmax.f32 %v722_v36, 0.0 }
 0x199   : > { %v875_v43 = vmax.f32 %v717_v40, 0.0  ;;  %v2991_v44 = vpop.f32.mrb[18].mxu1 }
 0x19a   : > { %v732_v48 = vadd.f32 %v2991_v44, %v4500_v32  ;;  %v726_v51 = vpop.f32.mrb[19].mxu1 }
 0x19b   : > { %v727_v52 = vadd.f32 %v4500_v32, %v726_v51  ;;  %3066 = vmatprep.mubr.f32.mxu0 %v875_v43 }
 0x19c   : > { %3067 = vmatmul.mubr.f32.vlgmr.msra.gmra.mrb[16].mxu0 %v876_v47  ;;  %v878_v59 = vmax.f32 %v732_v48, 0.0 }
 0x19d   : > { %v877_v55 = vmax.f32 %v727_v52, 0.0  ;;  %v2994_v56 = vpop.f32.mrb[20].mxu1 }
 0x19e   : > { %v742_v60 = vadd.f32 %v2994_v56, %v4500_v32  ;;  %v736_v63 = vpop.f32.mrb[21].mxu1 }
 0x19f   : > { %v737_v35 = vadd.f32 %v4500_v32, %v736_v63  ;;  %3069 = vmatprep.mubr.f32.mxu0 %v877_v55 }
 0x1a0   : > { %3070 = vmatmul.mubr.f32.gmra.mrb[18].mxu0 %v878_v59  ;;  %v880_v36 = vmax.f32 %v742_v60, 0.0 }
 0x1a1   : > { %v879_v39 = vmax.f32 %v737_v35, 0.0  ;;  %v2997_v40 = vpop.f32.mrb[22].mxu1 }
 0x1a2   : > { %v752_v44 = vadd.f32 %v2997_v40, %v4500_v32  ;;  %v746_v31 = vpop.f32.mrb[23].mxu1 }
 0x1a3   : > { %v747_v51 = vadd.f32 %v4500_v32, %v746_v31  ;;  %3072 = vmatprep.mubr.f32.mxu0 %v879_v39 }
 0x1a4   : > { %3073 = vmatmul.mubr.f32.gmra.mrb[20].mxu0 %v880_v36  ;;  %v882_v48 = vmax.f32 %v752_v44, 0.0 }
 0x1a5   : > { %v881_v43 = vmax.f32 %v747_v51, 0.0  ;;  %v3000_v47 = vpop.f32.mrb[24].mxu1 }
 0x1a6   : > { %v762_v52 = vadd.f32 %v3000_v47, %v4500_v32  ;;  %v756_v56 = vpop.f32.mrb[25].mxu1 }
 0x1a7   : > { %v757_v63 = vadd.f32 %v4500_v32, %v756_v56  ;;  %3075 = vmatprep.mubr.f32.mxu0 %v881_v43 }
 0x1a8   : > { %3076 = vmatmul.mubr.f32.gmra.mrb[22].mxu0 %v882_v48  ;;  %v884_v60 = vmax.f32 %v762_v52, 0.0 }
 0x1a9   : > { %v883_v55 = vmax.f32 %v757_v63, 0.0  ;;  %v3003_v59 = vpop.f32.mrb[26].mxu1 }
 0x1aa   : > { %v772_v35 = vadd.f32 %v3003_v59, %v4500_v32  ;;  %v766_v40 = vpop.f32.mrb[27].mxu1 }
 0x1ab   : > { %v767_v31 = vadd.f32 %v4500_v32, %v766_v40  ;;  %3078 = vmatprep.mubr.f32.mxu0 %v883_v55 }
 0x1ac   : > { %3079 = vmatmul.mubr.f32.gmra.mrb[24].mxu0 %v884_v60  ;;  %v886_v44 = vmax.f32 %v772_v35, 0.0 }
 0x1ad   : > { %v885_v39 = vmax.f32 %v767_v31, 0.0  ;;  %v3006_v36 = vpop.f32.mrb[28].mxu1 }
 0x1ae   : > { %v782_v51 = vadd.f32 %v3006_v36, %v4500_v32  ;;  %v776_v47 = vpop.f32.mrb[29].mxu1 }
 0x1af   : > { %v777_v56 = vadd.f32 %v4500_v32, %v776_v47  ;;  %3081 = vmatprep.mubr.f32.mxu0 %v885_v39 }
 0x1b0   : > { %3082 = vmatmul.mubr.f32.gmra.mrb[26].mxu0 %v886_v44  ;;  %v888_v52 = vmax.f32 %v782_v51, 0.0 }
 0x1b1   : > { %v887_v43 = vmax.f32 %v777_v56, 0.0  ;;  %v3009_v48 = vpop.f32.mrb[30].mxu1 }
 0x1b2   : > { %v792_v63 = vadd.f32 %v3009_v48, %v4500_v32  ;;  %v786_v59 = vpop.f32.mrb[31].mxu1 }
 0x1b3   : > { %v787_v40 = vadd.f32 %v4500_v32, %v786_v59  ;;  %3084 = vmatprep.mubr.f32.mxu0 %v887_v43 }
 0x1b4   : > { %3085 = vmatmul.mubr.f32.gmra.mrb[28].mxu0 %v888_v52  ;;  %v890_v35 = vmax.f32 %v792_v63, 0.0 }
 0x1b5   : > { %v889_v55 = vmax.f32 %v787_v40, 0.0  ;;  %v3012_v60 = vpop.f32.mrb[32].mxu1 }
 0x1b6   : > { %v802_v31 = vadd.f32 %v3012_v60, %v4500_v32  ;;  %v796_v36 = vpop.f32.mrb[33].mxu1 }
 0x1b7   : > { %v797_v47 = vadd.f32 %v4500_v32, %v796_v36  ;;  %3087 = vmatprep.mubr.f32.mxu0 %v889_v55 }
 0x1b8   : > { %3088 = vmatmul.mubr.f32.gmra.mrb[30].mxu0 %v890_v35  ;;  %v892_v51 = vmax.f32 %v802_v31, 0.0 }
 0x1b9   : > { %v891_v39 = vmax.f32 %v797_v47, 0.0  ;;  %v3015_v44 = vpop.f32.mrb[34].mxu1 }
 0x1ba   : > { %v812_v56 = vadd.f32 %v3015_v44, %v4500_v32  ;;  %v806_v48 = vpop.f32.mrb[35].mxu1 }
 0x1bb   : > { %v807_v59 = vadd.f32 %v4500_v32, %v806_v48  ;;  %3090 = vmatprep.mubr.f32.mxu0 %v891_v39 }
 0x1bc   : > { %3091 = vmatmul.mubr.f32.gmra.mrb[32].mxu0 %v892_v51  ;;  %v894_v63 = vmax.f32 %v812_v56, 0.0 }
 0x1bd   : > { %v893_v43 = vmax.f32 %v807_v59, 0.0  ;;  %v3018_v52 = vpop.f32.mrb[36].mxu1 }
 0x1be   : > { %v822_v40 = vadd.f32 %v3018_v52, %v4500_v32  ;;  %v816_v60 = vpop.f32.mrb[37].mxu1 }
 0x1bf   : > { %v817_v36 = vadd.f32 %v4500_v32, %v816_v60  ;;  %3093 = vmatprep.mubr.f32.mxu0 %v893_v43 }
 0x1c0   : > { %3094 = vmatmul.mubr.f32.gmra.mrb[34].mxu0 %v894_v63  ;;  %v896_v31 = vmax.f32 %v822_v40, 0.0 }
 0x1c1   : > { %v895_v55 = vmax.f32 %v817_v36, 0.0  ;;  %v3021_v35 = vpop.f32.mrb[38].mxu1 }
 0x1c2   : > { %v832_v47 = vadd.f32 %v3021_v35, %v4500_v32  ;;  %v826_v44 = vpop.f32.mrb[39].mxu1 }
 0x1c3   : > { %v827_v48 = vadd.f32 %v4500_v32, %v826_v44  ;;  %3096 = vmatprep.mubr.f32.mxu0 %v895_v55 }
 0x1c4   : > { %3097 = vmatmul.mubr.f32.gmra.mrb[36].mxu0 %v896_v31  ;;  %v898_v56 = vmax.f32 %v832_v47, 0.0 }
 0x1c5   : > { %v897_v39 = vmax.f32 %v827_v48, 0.0  ;;  %v3024_v51 = vpop.f32.mrb[40].mxu1 }
 0x1c6   : > { %v842_v59 = vadd.f32 %v3024_v51, %v4500_v32  ;;  %v836_v52 = vpop.f32.mrb[41].mxu1 }
 0x1c7   : > { %v837_v60 = vadd.f32 %v4500_v32, %v836_v52  ;;  %3099 = vmatprep.mubr.f32.mxu0 %v897_v39 }
 0x1c8   : > { %3100 = vmatmul.mubr.f32.gmra.mrb[38].mxu0 %v898_v56  ;;  %v900_v40 = vmax.f32 %v842_v59, 0.0 }
 0x1c9   : > { %v899_v43 = vmax.f32 %v837_v60, 0.0  ;;  %v3027_v63 = vpop.f32.mrb[42].mxu1 }
 0x1ca   : > { %v852_v36 = vadd.f32 %v3027_v63, %v4500_v32  ;;  %v846_v35 = vpop.f32.mrb[43].mxu1 }
 0x1cb   : > { %v847_v44 = vadd.f32 %v4500_v32, %v846_v35  ;;  %3102 = vmatprep.mubr.f32.mxu0 %v899_v43 }
 0x1cc   : > { %3103 = vmatmul.mubr.f32.gmra.mrb[40].mxu0 %v900_v40  ;;  %v902_v47 = vmax.f32 %v852_v36, 0.0  ;;  %v1472_v36 = vld [vmem:[#allocation7 + $0x280] sm:$0xff] }
 0x1cd   : > { %v901_v55 = vmax.f32 %v847_v44, 0.0  ;;  %v3030_v31 = vpop.f32.mrb[44].mxu1  ;;  %v1473_v44 = vld [vmem:[#allocation7 + $0x288] sm:$0xff] }
 0x1ce   : > { %v862_v48 = vadd.f32 %v3030_v31, %v4500_v32  ;;  %v856_v51 = vpop.f32.mrb[45].mxu1  ;;  %v1474_v31 = vld [vmem:[#allocation7 + $0x290] sm:$0xff] }
 0x1cf   : > { %v857_v52 = vadd.f32 %v4500_v32, %v856_v51  ;;  %3105 = vmatprep.mubr.f32.mxu0 %v901_v55  ;;  %v3562_v51 = vpack.c.bf16 %v1473_v44, %v1472_v36  ;;  %v1475_v55 = vld [vmem:[#allocation7 + $0x298] sm:$0xff]  ;;  %v1484_v36 = vld [vmem:[#allocation7 + $0x2e0] sm:$0xff]  ;;  %v1485_v44 = vld [vmem:[#allocation7 + $0x2e8] sm:$0xff] }
 0x1d0   : > { %3106 = vmatmul.mubr.f32.gmra.mrb[42].mxu0 %v902_v47  ;;  %v904_v59 = vmax.f32 %v862_v48, 0.0  ;;  %v3566_v47 = vpack.c.bf16 %v1475_v55, %v1474_v31  ;;  %v1486_v31 = vld [vmem:[#allocation7 + $0x2f0] sm:$0xff] }
 0x1d1   : > { %v903_v39 = vmax.f32 %v857_v52, 0.0  ;;  %v3033_v56 = vpop.f32.mrb[46].mxu1  ;;  %v1476_v52 = vld [vmem:[#allocation7 + $0x2a0] sm:$0xff]  ;;  %3563 = vmatprep.subr.bf16.mxu0 %v3562_v51 }
 0x1d2   : > { %v872_v60 = vadd.f32 %v3033_v56, %v4500_v32  ;;  %v866_v63 = vpop.f32.mrb[47].mxu1  ;;  %3565 = vmatpush3.bf16.msra.mxu0 %v3562_v51  ;;  %v3570_v48 = vpack.c.bf16 %v1477_v28, %v1476_v52  ;;  %v1478_v56 = vld [vmem:[#allocation7 + $0x2b0] sm:$0xff]  ;;  %v3586_v28 = vpack.c.bf16 %v1485_v44, %v1484_v36  ;;  %v1487_v51 = vld [vmem:[#allocation7 + $0x2f8] sm:$0xff] }
 0x1d3   : > { %v867_v35 = vadd.f32 %v4500_v32, %v866_v63  ;;  %3108 = vmatprep.mubr.f32.mxu0 %v903_v39  ;;  %3567 = vmatprep.subr.bf16.mxu0 %v3566_v47  ;;  %v1479_v32 = vld [vmem:[#allocation7 + $0x2b8] sm:$0xff]  ;;  %v3590_v55 = vpack.c.bf16 %v1487_v51, %v1486_v31 }
 0x1d4   : > { %3109 = vmatmul.mubr.f32.gmra.mrb[44].mxu0 %v904_v59  ;;  %v906_v40 = vmax.f32 %v872_v60, 0.0  ;;  %v3574_v39 = vpack.c.bf16 %v1479_v32, %v1478_v56  ;;  %v1480_v59 = vld [vmem:[#allocation7 + $0x2c0] sm:$0xff]  ;;  %v1481_v60 = vld [vmem:[#allocation7 + $0x2c8] sm:$0xff] }
 0x1d5   : > { %v905_v43 = vmax.f32 %v867_v35, 0.0  ;;  %v3578_v63 = vpack.c.bf16 %v1481_v60, %v1480_v59  ;;  %v1482_v35 = vld [vmem:[#allocation7 + $0x2d0] sm:$0xff] }
 0x1d6   : > { %3569 = vmatpush3.bf16.msra.mxu0 %v3566_v47  ;;  %v4537_v47 = vld [vmem:[%s5132_s3 + $0x5] ss:$0 sm:$0xff] }
 0x1d7   : > { %3111 = vmatprep.mubr.f32.mxu0 %v905_v43  ;;  %3571 = vmatprep.subr.bf16.mxu0 %v3570_v48  ;;  %v1483_v43 = vld [vmem:[#allocation7 + $0x2d8] sm:$0xff] }
 0x1d8   : > { %3112 = vmatmul.mubr.f32.gmra.mrb[46].mxu0 %v906_v40  ;;  %v3582_v40 = vpack.c.bf16 %v1483_v43, %v1482_v35 }
 0x1da   : > { %3573 = vmatpush3.bf16.msra.mxu0 %v3570_v48 }
 0x1db   : > { %3575 = vmatprep.subr.bf16.mxu0 %v3574_v39 }
 0x1de   : > { %3577 = vmatpush3.bf16.msra.mxu0 %v3574_v39 }
 0x1df   : > { %3579 = vmatprep.subr.bf16.mxu0 %v3578_v63 }
 0x1e2   : > { %3581 = vmatpush3.bf16.msra.mxu0 %v3578_v63 }
 0x1e3   : > { %3583 = vmatprep.subr.bf16.mxu0 %v3582_v40 }
 0x1e6   : > { %3585 = vmatpush3.bf16.msra.mxu0 %v3582_v40 }
 0x1e7   : > { %3587 = vmatprep.subr.bf16.mxu0 %v3586_v28 }
 0x1ea   : > { %3589 = vmatpush3.bf16.msra.mxu0 %v3586_v28 }
 0x1eb   : > { %3591 = vmatprep.subr.bf16.mxu0 %v3590_v55 }
 0x1ee   : > { %3593 = vmatpush3.bf16.msra.mxu0 %v3590_v55 }
 0x26f   : > { %v3068_v52 = vpop.f32.mrb[16].mxu0 }
 0x270   : > { %v1004_v48 = vadd.f32 %v3068_v52, %v4537_v47  ;;  %v998_v56 = vpop.f32.mrb[17].mxu0 }
 0x271   : > { %v999_v32 = vadd.f32 %v4537_v47, %v998_v56 }
 0x272   : > { %v4545_v60 = vadd.f32 %v1004_v48, %v4296_v5 }
 0x273   : > { %v4542_v39 = vadd.f32 %v999_v32, %v4291_v2  ;;  %v3071_v59 = vpop.f32.mrb[18].mxu0 }
 0x274   : > { %v1014_v63 = vadd.f32 %v3071_v59, %v4537_v47  ;;  %v1008_v35 = vpop.f32.mrb[19].mxu0 }
 0x275   : > { %v1009_v43 = vadd.f32 %v4537_v47, %v1008_v35  ;;  %3146 = vmatprep.mubr.f32.mxu1 %v4542_v39 }
 0x276   : > { %3147 = vmatmul.mubr.f32.vlgmr.msra.gmra.mrb[48].mxu1 %v4545_v60  ;;  %v4555_v2 = vadd.f32 %v1014_v63, %v4306_v9 }
 0x277   : > { %v4552_v40 = vadd.f32 %v1009_v43, %v4300_v6  ;;  %v3074_v36 = vpop.f32.mrb[20].mxu0 }
 0x278   : > { %v1024_v44 = vadd.f32 %v3074_v36, %v4537_v47  ;;  %v1018_v5 = vpop.f32.mrb[21].mxu0 }
 0x279   : > { %v1019_v28 = vadd.f32 %v4537_v47, %v1018_v5  ;;  %3149 = vmatprep.mubr.f32.mxu1 %v4552_v40 }
 0x27a   : > { %3150 = vmatmul.mubr.f32.gmra.mrb[50].mxu1 %v4555_v2  ;;  %v4565_v6 = vadd.f32 %v1024_v44, %v4316_v13 }
 0x27b   : > { %v4562_v31 = vadd.f32 %v1019_v28, %v4310_v10  ;;  %v3077_v51 = vpop.f32.mrb[22].mxu0 }
 0x27c   : > { %v1034_v55 = vadd.f32 %v3077_v51, %v4537_v47  ;;  %v1028_v9 = vpop.f32.mrb[23].mxu0 }
 0x27d   : > { %v1029_v52 = vadd.f32 %v4537_v47, %v1028_v9  ;;  %3152 = vmatprep.mubr.f32.mxu1 %v4562_v31 }
 0x27e   : > { %3153 = vmatmul.mubr.f32.gmra.mrb[52].mxu1 %v4565_v6  ;;  %v4575_v10 = vadd.f32 %v1034_v55, %v4326_v17 }
 0x27f   : > { %v4572_v48 = vadd.f32 %v1029_v52, %v4320_v14  ;;  %v3080_v56 = vpop.f32.mrb[24].mxu0 }
 0x280   : > { %v1044_v32 = vadd.f32 %v3080_v56, %v4537_v47  ;;  %v1038_v13 = vpop.f32.mrb[25].mxu0 }
 0x281   : > { %v1039_v59 = vadd.f32 %v4537_v47, %v1038_v13  ;;  %3155 = vmatprep.mubr.f32.mxu1 %v4572_v48 }
 0x282   : > { %3156 = vmatmul.mubr.f32.gmra.mrb[54].mxu1 %v4575_v10  ;;  %v4585_v14 = vadd.f32 %v1044_v32, %v4336_v21 }
 0x283   : > { %v4582_v63 = vadd.f32 %v1039_v59, %v4330_v18  ;;  %v3083_v35 = vpop.f32.mrb[26].mxu0 }
 0x284   : > { %v1054_v43 = vadd.f32 %v3083_v35, %v4537_v47  ;;  %v1048_v17 = vpop.f32.mrb[27].mxu0 }
 0x285   : > { %v1049_v36 = vadd.f32 %v4537_v47, %v1048_v17  ;;  %3158 = vmatprep.mubr.f32.mxu1 %v4582_v63 }
 0x286   : > { %3159 = vmatmul.mubr.f32.gmra.mrb[56].mxu1 %v4585_v14  ;;  %v4595_v18 = vadd.f32 %v1054_v43, %v4346_v25 }
 0x287   : > { %v4592_v44 = vadd.f32 %v1049_v36, %v4340_v22  ;;  %v3086_v5 = vpop.f32.mrb[28].mxu0 }
 0x288   : > { %v1064_v28 = vadd.f32 %v3086_v5, %v4537_v47  ;;  %v1058_v21 = vpop.f32.mrb[29].mxu0 }
 0x289   : > { %v1059_v51 = vadd.f32 %v4537_v47, %v1058_v21  ;;  %3161 = vmatprep.mubr.f32.mxu1 %v4592_v44 }
 0x28a   : > { %3162 = vmatmul.mubr.f32.gmra.mrb[58].mxu1 %v4595_v18  ;;  %v4605_v22 = vadd.f32 %v1064_v28, %v4356_v29 }
 0x28b   : > { %v4602_v55 = vadd.f32 %v1059_v51, %v4350_v26  ;;  %v3089_v9 = vpop.f32.mrb[30].mxu0 }
 0x28c   : > { %v1074_v52 = vadd.f32 %v3089_v9, %v4537_v47  ;;  %v1068_v25 = vpop.f32.mrb[31].mxu0 }
 0x28d   : > { %v1069_v56 = vadd.f32 %v4537_v47, %v1068_v25  ;;  %3164 = vmatprep.mubr.f32.mxu1 %v4602_v55 }
 0x28e   : > { %3165 = vmatmul.mubr.f32.gmra.mrb[60].mxu1 %v4605_v22  ;;  %v4615_v26 = vadd.f32 %v1074_v52, %v4366_v33 }
 0x28f   : > { %v4612_v32 = vadd.f32 %v1069_v56, %v4360_v30  ;;  %v3092_v13 = vpop.f32.mrb[32].mxu0 }
 0x290   : > { %v1084_v59 = vadd.f32 %v3092_v13, %v4537_v47  ;;  %v1078_v29 = vpop.f32.mrb[33].mxu0 }
 0x291   : > { %v1079_v35 = vadd.f32 %v4537_v47, %v1078_v29  ;;  %3167 = vmatprep.mubr.f32.mxu1 %v4612_v32 }
 0x292   : > { %3168 = vmatmul.mubr.f32.gmra.mrb[62].mxu1 %v4615_v26  ;;  %v4625_v30 = vadd.f32 %v1084_v59, %v4376_v37 }
 0x293   : > { %v4622_v43 = vadd.f32 %v1079_v35, %v4370_v34  ;;  %v3095_v17 = vpop.f32.mrb[34].mxu0 }
 0x294   : > { %v1094_v36 = vadd.f32 %v3095_v17, %v4537_v47  ;;  %v1088_v33 = vpop.f32.mrb[35].mxu0 }
 0x295   : > { %v1089_v5 = vadd.f32 %v4537_v47, %v1088_v33  ;;  %3170 = vmatprep.mubr.f32.mxu1 %v4622_v43 }
 0x296   : > { %3171 = vmatmul.mubr.f32.gmra.mrb[64].mxu1 %v4625_v30  ;;  %v4635_v34 = vadd.f32 %v1094_v36, %v4386_v41 }
 0x297   : > { %v4632_v28 = vadd.f32 %v1089_v5, %v4380_v38  ;;  %v3098_v21 = vpop.f32.mrb[36].mxu0 }
 0x298   : > { %v1104_v51 = vadd.f32 %v3098_v21, %v4537_v47  ;;  %v1098_v37 = vpop.f32.mrb[37].mxu0 }
 0x299   : > { %v1099_v9 = vadd.f32 %v4537_v47, %v1098_v37  ;;  %3173 = vmatprep.mubr.f32.mxu1 %v4632_v28 }
 0x29a   : > { %3174 = vmatmul.mubr.f32.gmra.mrb[66].mxu1 %v4635_v34  ;;  %v4645_v38 = vadd.f32 %v1104_v51, %v4396_v45 }
 0x29b   : > { %v4642_v52 = vadd.f32 %v1099_v9, %v4390_v42  ;;  %v3101_v25 = vpop.f32.mrb[38].mxu0 }
 0x29c   : > { %v1114_v56 = vadd.f32 %v3101_v25, %v4537_v47  ;;  %v1108_v41 = vpop.f32.mrb[39].mxu0 }
 0x29d   : > { %v1109_v13 = vadd.f32 %v4537_v47, %v1108_v41  ;;  %3176 = vmatprep.mubr.f32.mxu1 %v4642_v52 }
 0x29e   : > { %3177 = vmatmul.mubr.f32.gmra.mrb[68].mxu1 %v4645_v38  ;;  %v4655_v42 = vadd.f32 %v1114_v56, %v4406_v49 }
 0x29f   : > { %v4652_v59 = vadd.f32 %v1109_v13, %v4400_v46  ;;  %v3104_v29 = vpop.f32.mrb[40].mxu0 }
 0x2a0   : > { %v1124_v35 = vadd.f32 %v3104_v29, %v4537_v47  ;;  %v1118_v45 = vpop.f32.mrb[41].mxu0 }
 0x2a1   : > { %v1119_v17 = vadd.f32 %v4537_v47, %v1118_v45  ;;  %3179 = vmatprep.mubr.f32.mxu1 %v4652_v59 }
 0x2a2   : > { %3180 = vmatmul.mubr.f32.gmra.mrb[70].mxu1 %v4655_v42  ;;  %v4665_v46 = vadd.f32 %v1124_v35, %v4416_v53 }
 0x2a3   : > { %v4662_v36 = vadd.f32 %v1119_v17, %v4410_v50  ;;  %v3107_v33 = vpop.f32.mrb[42].mxu0  ;;  %v1756_v17 = vld [vmem:[#allocation7 + $0x190] sm:$0xff] }
 0x2a4   : > { %v1134_v5 = vadd.f32 %v3107_v33, %v4537_v47  ;;  %v1128_v49 = vpop.f32.mrb[43].mxu0 }
 0x2a5   : > { %v1129_v21 = vadd.f32 %v4537_v47, %v1128_v49  ;;  %3182 = vmatprep.mubr.f32.mxu1 %v4662_v36  ;;  %v1758_v49 = vld [vmem:[#allocation7 + $0x1a0] sm:$0xff] }
 0x2a6   : > { %3183 = vmatmul.mubr.f32.gmra.mrb[72].mxu1 %v4665_v46  ;;  %v4675_v50 = vadd.f32 %v1134_v5, %v4426_v57  ;;  %v1757_v5 = vld [vmem:[#allocation7 + $0x198] sm:$0xff] }
 0x2a7   : > { %v4672_v51 = vadd.f32 %v1129_v21, %v4420_v54  ;;  %v3110_v37 = vpop.f32.mrb[44].mxu0  ;;  %v1759_v21 = vld [vmem:[#allocation7 + $0x1a8] sm:$0xff] }
 0x2a8   : > { %v1144_v9 = vadd.f32 %v3110_v37, %v4537_v47  ;;  %v1138_v53 = vpop.f32.mrb[45].mxu0  ;;  %v1760_v37 = vld [vmem:[#allocation7 + $0x1b0] sm:$0xff] }
 0x2a9   : > { %v1139_v25 = vadd.f32 %v4537_v47, %v1138_v53  ;;  %3185 = vmatprep.mubr.f32.mxu1 %v4672_v51  ;;  %v1762_v53 = vld [vmem:[#allocation7 + $0x1c0] sm:$0xff] }
 0x2aa   : > { %3186 = vmatmul.mubr.f32.gmra.mrb[74].mxu1 %v4675_v50  ;;  %v4685_v54 = vadd.f32 %v1144_v9, %v4436_v61  ;;  %v1755_v61 = vld [vmem:[#allocation7 + $0x188] sm:$0xff]  ;;  %v1761_v9 = vld [vmem:[#allocation7 + $0x1b8] sm:$0xff] }
 0x2ab   : > { %v4682_v56 = vadd.f32 %v1139_v25, %v4430_v58  ;;  %v3113_v41 = vpop.f32.mrb[46].mxu0  ;;  %v1754_v58 = vld [vmem:[#allocation7 + $0x180] sm:$0xff]  ;;  %v1763_v25 = vld [vmem:[#allocation7 + $0x1c8] sm:$0xff] }
 0x2ac   : > { %v1154_v13 = vadd.f32 %v3113_v41, %v4537_v47  ;;  %v1148_v57 = vpop.f32.mrb[47].mxu0  ;;  %v3594_v33 = vpack.c.bf16 %v1755_v61, %v1754_v58  ;;  %v3610_v41 = vpack.c.bf16 %v1763_v25, %v1762_v53  ;;  %v1766_v58 = vld [vmem:[#allocation7 + $0x1e0] sm:$0xff]  ;;  %v1767_v61 = vld [vmem:[#allocation7 + $0x1e8] sm:$0xff] }
 0x2ad   : > { %v1149_v29 = vadd.f32 %v4537_v47, %v1148_v57  ;;  %3188 = vmatprep.mubr.f32.mxu1 %v4682_v56  ;;  %v3598_v47 = vpack.c.bf16 %v1757_v5, %v1756_v17  ;;  %v1765_v57 = vld [vmem:[#allocation7 + $0x1d8] sm:$0xff]  ;;  %v3618_v17 = vpack.c.bf16 %v1767_v61, %v1766_v58 }
 0x2ae   : > { %3189 = vmatmul.mubr.f32.gmra.mrb[76].mxu1 %v4685_v54  ;;  %v4695_v45 = vadd.f32 %v1154_v13, %v4445_v4  ;;  %3595 = vmatprep.subr.bf16.mxu1 %v3594_v33  ;;  %v3606_v4 = vpack.c.bf16 %v1761_v9, %v1760_v37  ;;  %v1764_v13 = vld [vmem:[#allocation7 + $0x1d0] sm:$0xff]  ;;  %v1769_v5 = vld [vmem:[#allocation7 + $0x1f8] sm:$0xff] }
 0x2af   : > { %v4692_v35 = vadd.f32 %v1149_v29, %v4440_v62  ;;  %3597 = vmatpush3.bf16.msra.mxu1 %v3594_v33  ;;  %v3602_v62 = vpack.c.bf16 %v1759_v21, %v1758_v49  ;;  %v3614_v29 = vpack.c.bf16 %v1765_v57, %v1764_v13  ;;  %v1768_v33 = vld [vmem:[#allocation7 + $0x1f0] sm:$0xff]  ;;  %v4702_v49 = vld [vmem:[%s5132_s3 + $0x3] ss:$0 sm:$0xff] }
 0x2b0   : > { %3599 = vmatprep.subr.bf16.mxu1 %v3598_v47 }
 0x2b1   : > { %3191 = vmatprep.mubr.f32.mxu1 %v4692_v35 }
 0x2b2   : > { %3192 = vmatmul.mubr.f32.gmra.mrb[78].mxu1 %v4695_v45 }
 0x2b3   : > { %3601 = vmatpush3.bf16.msra.mxu1 %v3598_v47  ;;  %v3622_v47 = vpack.c.bf16 %v1769_v5, %v1768_v33 }
 0x2b4   : > { %3603 = vmatprep.subr.bf16.mxu1 %v3602_v62 }
 0x2b7   : > { %3605 = vmatpush3.bf16.msra.mxu1 %v3602_v62 }
 0x2b8   : > { %3607 = vmatprep.subr.bf16.mxu1 %v3606_v4 }
 0x2bb   : > { %3609 = vmatpush3.bf16.msra.mxu1 %v3606_v4 }
 0x2bc   : > { %3611 = vmatprep.subr.bf16.mxu1 %v3610_v41 }
 0x2bf   : > { %3613 = vmatpush3.bf16.msra.mxu1 %v3610_v41 }
 0x2c0   : > { %3615 = vmatprep.subr.bf16.mxu1 %v3614_v29 }
 0x2c3   : > { %3617 = vmatpush3.bf16.msra.mxu1 %v3614_v29 }
 0x2c4   : > { %3619 = vmatprep.subr.bf16.mxu1 %v3618_v17 }
 0x2c7   : > { %3621 = vmatpush3.bf16.msra.mxu1 %v3618_v17 }
 0x2c8   : > { %3623 = vmatprep.subr.bf16.mxu1 %v3622_v47 }
 0x2cb   : > { %3625 = vmatpush3.bf16.msra.mxu1 %v3622_v47 }
 0x349   : > { %v3148_v21 = vpop.f32.mrb[48].mxu1 }
 0x34a   : > { %v1286_v62 = vadd.f32 %v3148_v21, %v4702_v49  ;;  %v1280_v37 = vpop.f32.mrb[49].mxu1 }
 0x34b   : > { %v1281_v9 = vadd.f32 %v4702_v49, %v1280_v37 }
 0x34c   : > { %v1440_v25 = vmax.f32 %v1286_v62, 0.0 }
 0x34d   : > { %v1439_v4 = vmax.f32 %v1281_v9, 0.0  ;;  %v3151_v53 = vpop.f32.mrb[50].mxu1 }
 0x34e   : > { %v1296_v41 = vadd.f32 %v3151_v53, %v4702_v49  ;;  %v1290_v13 = vpop.f32.mrb[51].mxu1 }
 0x34f   : > { %v1291_v57 = vadd.f32 %v4702_v49, %v1290_v13  ;;  %3226 = vmatprep.mubr.f32.mxu0 %v1439_v4 }
 0x350   : > { %3227 = vmatmul.mubr.f32.vlgmr.msra.gmra.mrb[48].mxu0 %v1440_v25  ;;  %v1442_v61 = vmax.f32 %v1296_v41, 0.0 }
 0x351   : > { %v1441_v29 = vmax.f32 %v1291_v57, 0.0  ;;  %v3154_v58 = vpop.f32.mrb[52].mxu1 }
 0x352   : > { %v1306_v17 = vadd.f32 %v3154_v58, %v4702_v49  ;;  %v1300_v33 = vpop.f32.mrb[53].mxu1 }
 0x353   : > { %v1301_v5 = vadd.f32 %v4702_v49, %v1300_v33  ;;  %3229 = vmatprep.mubr.f32.mxu0 %v1441_v29 }
 0x354   : > { %3230 = vmatmul.mubr.f32.gmra.mrb[50].mxu0 %v1442_v61  ;;  %v1444_v62 = vmax.f32 %v1306_v17, 0.0 }
 0x355   : > { %v1443_v47 = vmax.f32 %v1301_v5, 0.0  ;;  %v3157_v21 = vpop.f32.mrb[54].mxu1 }
 0x356   : > { %v1316_v37 = vadd.f32 %v3157_v21, %v4702_v49  ;;  %v1310_v9 = vpop.f32.mrb[55].mxu1 }
 0x357   : > { %v1311_v53 = vadd.f32 %v4702_v49, %v1310_v9  ;;  %3232 = vmatprep.mubr.f32.mxu0 %v1443_v47 }
 0x358   : > { %3233 = vmatmul.mubr.f32.gmra.mrb[52].mxu0 %v1444_v62  ;;  %v1446_v41 = vmax.f32 %v1316_v37, 0.0 }
 0x359   : > { %v1445_v4 = vmax.f32 %v1311_v53, 0.0  ;;  %v3160_v25 = vpop.f32.mrb[56].mxu1 }
 0x35a   : > { %v1326_v13 = vadd.f32 %v3160_v25, %v4702_v49  ;;  %v1320_v57 = vpop.f32.mrb[57].mxu1 }
 0x35b   : > { %v1321_v58 = vadd.f32 %v4702_v49, %v1320_v57  ;;  %3235 = vmatprep.mubr.f32.mxu0 %v1445_v4 }
 0x35c   : > { %3236 = vmatmul.mubr.f32.gmra.mrb[54].mxu0 %v1446_v41  ;;  %v1448_v17 = vmax.f32 %v1326_v13, 0.0 }
 0x35d   : > { %v1447_v29 = vmax.f32 %v1321_v58, 0.0  ;;  %v3163_v61 = vpop.f32.mrb[58].mxu1 }
 0x35e   : > { %v1336_v33 = vadd.f32 %v3163_v61, %v4702_v49  ;;  %v1330_v5 = vpop.f32.mrb[59].mxu1 }
 0x35f   : > { %v1331_v21 = vadd.f32 %v4702_v49, %v1330_v5  ;;  %3238 = vmatprep.mubr.f32.mxu0 %v1447_v29 }
 0x360   : > { %3239 = vmatmul.mubr.f32.gmra.mrb[56].mxu0 %v1448_v17  ;;  %v1450_v37 = vmax.f32 %v1336_v33, 0.0 }
 0x361   : > { %v1449_v47 = vmax.f32 %v1331_v21, 0.0  ;;  %v3166_v62 = vpop.f32.mrb[60].mxu1 }
 0x362   : > { %v1346_v9 = vadd.f32 %v3166_v62, %v4702_v49  ;;  %v1340_v53 = vpop.f32.mrb[61].mxu1 }
 0x363   : > { %v1341_v25 = vadd.f32 %v4702_v49, %v1340_v53  ;;  %3241 = vmatprep.mubr.f32.mxu0 %v1449_v47 }
 0x364   : > { %3242 = vmatmul.mubr.f32.gmra.mrb[58].mxu0 %v1450_v37  ;;  %v1452_v13 = vmax.f32 %v1346_v9, 0.0 }
 0x365   : > { %v1451_v4 = vmax.f32 %v1341_v25, 0.0  ;;  %v3169_v41 = vpop.f32.mrb[62].mxu1 }
 0x366   : > { %v1356_v57 = vadd.f32 %v3169_v41, %v4702_v49  ;;  %v1350_v58 = vpop.f32.mrb[63].mxu1 }
 0x367   : > { %v1351_v61 = vadd.f32 %v4702_v49, %v1350_v58  ;;  %3244 = vmatprep.mubr.f32.mxu0 %v1451_v4 }
 0x368   : > { %3245 = vmatmul.mubr.f32.gmra.mrb[60].mxu0 %v1452_v13  ;;  %v1454_v33 = vmax.f32 %v1356_v57, 0.0 }
 0x369   : > { %v1453_v29 = vmax.f32 %v1351_v61, 0.0  ;;  %v3172_v17 = vpop.f32.mrb[64].mxu1 }
 0x36a   : > { %v1366_v5 = vadd.f32 %v3172_v17, %v4702_v49  ;;  %v1360_v21 = vpop.f32.mrb[65].mxu1 }
 0x36b   : > { %v1361_v62 = vadd.f32 %v4702_v49, %v1360_v21  ;;  %3247 = vmatprep.mubr.f32.mxu0 %v1453_v29 }
 0x36c   : > { %3248 = vmatmul.mubr.f32.gmra.mrb[62].mxu0 %v1454_v33  ;;  %v1456_v9 = vmax.f32 %v1366_v5, 0.0 }
 0x36d   : > { %v1455_v47 = vmax.f32 %v1361_v62, 0.0  ;;  %v3175_v37 = vpop.f32.mrb[66].mxu1 }
 0x36e   : > { %v1376_v53 = vadd.f32 %v3175_v37, %v4702_v49  ;;  %v1370_v25 = vpop.f32.mrb[67].mxu1 }
 0x36f   : > { %v1371_v41 = vadd.f32 %v4702_v49, %v1370_v25  ;;  %3250 = vmatprep.mubr.f32.mxu0 %v1455_v47 }
 0x370   : > { %3251 = vmatmul.mubr.f32.gmra.mrb[64].mxu0 %v1456_v9  ;;  %v1458_v57 = vmax.f32 %v1376_v53, 0.0 }
 0x371   : > { %v1457_v4 = vmax.f32 %v1371_v41, 0.0  ;;  %v3178_v13 = vpop.f32.mrb[68].mxu1 }
 0x372   : > { %v1386_v58 = vadd.f32 %v3178_v13, %v4702_v49  ;;  %v1380_v61 = vpop.f32.mrb[69].mxu1 }
 0x373   : > { %v1381_v17 = vadd.f32 %v4702_v49, %v1380_v61  ;;  %3253 = vmatprep.mubr.f32.mxu0 %v1457_v4 }
 0x374   : > { %3254 = vmatmul.mubr.f32.gmra.mrb[66].mxu0 %v1458_v57  ;;  %v1460_v5 = vmax.f32 %v1386_v58, 0.0 }
 0x375   : > { %v1459_v29 = vmax.f32 %v1381_v17, 0.0  ;;  %v3181_v33 = vpop.f32.mrb[70].mxu1 }
 0x376   : > { %v1396_v21 = vadd.f32 %v3181_v33, %v4702_v49  ;;  %v1390_v62 = vpop.f32.mrb[71].mxu1 }
 0x377   : > { %v1391_v37 = vadd.f32 %v4702_v49, %v1390_v62  ;;  %3256 = vmatprep.mubr.f32.mxu0 %v1459_v29 }
 0x378   : > { %3257 = vmatmul.mubr.f32.gmra.mrb[68].mxu0 %v1460_v5  ;;  %v1462_v53 = vmax.f32 %v1396_v21, 0.0 }
 0x379   : > { %v1461_v47 = vmax.f32 %v1391_v37, 0.0  ;;  %v3184_v9 = vpop.f32.mrb[72].mxu1 }
 0x37a   : > { %v1406_v25 = vadd.f32 %v3184_v9, %v4702_v49  ;;  %v1400_v41 = vpop.f32.mrb[73].mxu1 }
 0x37b   : > { %v1401_v13 = vadd.f32 %v4702_v49, %v1400_v41  ;;  %3259 = vmatprep.mubr.f32.mxu0 %v1461_v47 }
 0x37c   : > { %3260 = vmatmul.mubr.f32.gmra.mrb[70].mxu0 %v1462_v53  ;;  %v1464_v58 = vmax.f32 %v1406_v25, 0.0 }
 0x37d   : > { %v1463_v4 = vmax.f32 %v1401_v13, 0.0  ;;  %v3187_v57 = vpop.f32.mrb[74].mxu1 }
 0x37e   : > { %v1416_v61 = vadd.f32 %v3187_v57, %v4702_v49  ;;  %v1410_v17 = vpop.f32.mrb[75].mxu1 }
 0x37f   : > { %v1411_v33 = vadd.f32 %v4702_v49, %v1410_v17  ;;  %3262 = vmatprep.mubr.f32.mxu0 %v1463_v4  ;;  %v2037_v17 = vld [vmem:[#allocation7 + $0x308] sm:$0xff] }
 0x380   : > { %3263 = vmatmul.mubr.f32.gmra.mrb[72].mxu0 %v1464_v58  ;;  %v1466_v21 = vmax.f32 %v1416_v61, 0.0  ;;  %v2036_v61 = vld [vmem:[#allocation7 + $0x300] sm:$0xff] }
 0x381   : > { %v1465_v29 = vmax.f32 %v1411_v33, 0.0  ;;  %v3190_v5 = vpop.f32.mrb[76].mxu1  ;;  %v2038_v33 = vld [vmem:[#allocation7 + $0x310] sm:$0xff] }
 0x382   : > { %v1426_v62 = vadd.f32 %v3190_v5, %v4702_v49  ;;  %v1420_v37 = vpop.f32.mrb[77].mxu1  ;;  %v3626_v5 = vpack.c.bf16 %v2037_v17, %v2036_v61  ;;  %v2048_v61 = vld [vmem:[#allocation7 + $0x360] sm:$0xff]  ;;  %v2049_v17 = vld [vmem:[#allocation7 + $0x368] sm:$0xff] }
 0x383   : > { %v1421_v9 = vadd.f32 %v4702_v49, %v1420_v37  ;;  %3265 = vmatprep.mubr.f32.mxu0 %v1465_v29  ;;  %v2039_v29 = vld [vmem:[#allocation7 + $0x318] sm:$0xff]  ;;  %v2040_v37 = vld [vmem:[#allocation7 + $0x320] sm:$0xff] }
 0x384   : > { %3266 = vmatmul.mubr.f32.gmra.mrb[74].mxu0 %v1466_v21  ;;  %v1468_v25 = vmax.f32 %v1426_v62, 0.0  ;;  %v3630_v21 = vpack.c.bf16 %v2039_v29, %v2038_v33  ;;  %3627 = vmatprep.subr.bf16.mxu0 %v3626_v5  ;;  %v3650_v33 = vpack.c.bf16 %v2049_v17, %v2048_v61  ;;  %v2051_v29 = vld [vmem:[#allocation7 + $0x378] sm:$0xff] }
 0x385   : > { %v1467_v47 = vmax.f32 %v1421_v9, 0.0  ;;  %v3193_v53 = vpop.f32.mrb[78].mxu1  ;;  %v2041_v9 = vld [vmem:[#allocation7 + $0x328] sm:$0xff]  ;;  %3629 = vmatpush3.bf16.msra.mxu0 %v3626_v5  ;;  %v2050_v5 = vld [vmem:[#allocation7 + $0x370] sm:$0xff] }
 0x386   : > { %v1436_v41 = vadd.f32 %v3193_v53, %v4702_v49  ;;  %v1430_v13 = vpop.f32.mrb[79].mxu1  ;;  %3631 = vmatprep.subr.bf16.mxu0 %v3630_v21  ;;  %v3634_v62 = vpack.c.bf16 %v2041_v9, %v2040_v37  ;;  %v2042_v53 = vld [vmem:[#allocation7 + $0x330] sm:$0xff]  ;;  %v4739_v37 = vld [vmem:[%s5132_s3 + $0x6] ss:$0 sm:$0xff] }
 0x387   : > { %v1431_v57 = vadd.f32 %v4702_v49, %v1430_v13  ;;  %3268 = vmatprep.mubr.f32.mxu0 %v1467_v47  ;;  %v2043_v49 = vld [vmem:[#allocation7 + $0x338] sm:$0xff] }
 0x388   : > { %3269 = vmatmul.mubr.f32.gmra.mrb[76].mxu0 %v1468_v25  ;;  %v1470_v58 = vmax.f32 %v1436_v41, 0.0  ;;  %v3638_v47 = vpack.c.bf16 %v2043_v49, %v2042_v53  ;;  %v2044_v25 = vld [vmem:[#allocation7 + $0x340] sm:$0xff]  ;;  %v2045_v41 = vld [vmem:[#allocation7 + $0x348] sm:$0xff] }
 0x389   : > { %v1469_v4 = vmax.f32 %v1431_v57, 0.0  ;;  %3633 = vmatpush3.bf16.msra.mxu0 %v3630_v21  ;;  %v3642_v13 = vpack.c.bf16 %v2045_v41, %v2044_v25  ;;  %v2046_v57 = vld [vmem:[#allocation7 + $0x350] sm:$0xff]  ;;  %v3654_v21 = vpack.c.bf16 %v2051_v29, %v2050_v5 }
 0x38a   : > { %3635 = vmatprep.subr.bf16.mxu0 %v3634_v62 }
 0x38b   : > { %3271 = vmatprep.mubr.f32.mxu0 %v1469_v4  ;;  %v2047_v4 = vld [vmem:[#allocation7 + $0x358] sm:$0xff] }
 0x38c   : > { %3272 = vmatmul.mubr.f32.gmra.mrb[78].mxu0 %v1470_v58  ;;  %v3646_v58 = vpack.c.bf16 %v2047_v4, %v2046_v57 }
 0x38d   : > { %3637 = vmatpush3.bf16.msra.mxu0 %v3634_v62 }
 0x38e   : > { %3639 = vmatprep.subr.bf16.mxu0 %v3638_v47 }
 0x391   : > { %3641 = vmatpush3.bf16.msra.mxu0 %v3638_v47 }
 0x392   : > { %3643 = vmatprep.subr.bf16.mxu0 %v3642_v13 }
 0x395   : > { %3645 = vmatpush3.bf16.msra.mxu0 %v3642_v13 }
 0x396   : > { %3647 = vmatprep.subr.bf16.mxu0 %v3646_v58 }
 0x399   : > { %3649 = vmatpush3.bf16.msra.mxu0 %v3646_v58 }
 0x39a   : > { %3651 = vmatprep.subr.bf16.mxu0 %v3650_v33 }
 0x39d   : > { %3653 = vmatpush3.bf16.msra.mxu0 %v3650_v33 }
 0x39e   : > { %3655 = vmatprep.subr.bf16.mxu0 %v3654_v21 }
 0x3a1   : > { %3657 = vmatpush3.bf16.msra.mxu0 %v3654_v21 }
 0x423   : > { %v3228_v9 = vpop.f32.mrb[48].mxu0 }
 0x424   : > { %v1568_v62 = vadd.f32 %v3228_v9, %v4739_v37  ;;  %v1562_v53 = vpop.f32.mrb[49].mxu0 }
 0x425   : > { %v1563_v49 = vadd.f32 %v4739_v37, %v1562_v53 }
 0x426   : > { %v4747_v41 = vadd.f32 %v1568_v62, %v4545_v60 }
 0x427   : > { %v4744_v47 = vadd.f32 %v1563_v49, %v4542_v39  ;;  %v3231_v25 = vpop.f32.mrb[50].mxu0 }
 0x428   : > { %v1578_v13 = vadd.f32 %v3231_v25, %v4739_v37  ;;  %v1572_v57 = vpop.f32.mrb[51].mxu0 }
 0x429   : > { %v1573_v4 = vadd.f32 %v4739_v37, %v1572_v57  ;;  %3306 = vmatprep.mubr.f32.mxu1 %v4744_v47 }
 0x42a   : > { %3307 = vmatmul.mubr.f32.vlgmr.msra.gmra.mrb[80].mxu1 %v4747_v41  ;;  %v4757_v39 = vadd.f32 %v1578_v13, %v4555_v2 }
 0x42b   : > { %v4754_v58 = vadd.f32 %v1573_v4, %v4552_v40  ;;  %v3234_v61 = vpop.f32.mrb[52].mxu0 }
 0x42c   : > { %v1588_v17 = vadd.f32 %v3234_v61, %v4739_v37  ;;  %v1582_v60 = vpop.f32.mrb[53].mxu0 }
 0x42d   : > { %v1583_v33 = vadd.f32 %v4739_v37, %v1582_v60  ;;  %3309 = vmatprep.mubr.f32.mxu1 %v4754_v58 }
 0x42e   : > { %3310 = vmatmul.mubr.f32.gmra.mrb[82].mxu1 %v4757_v39  ;;  %v4767_v40 = vadd.f32 %v1588_v17, %v4565_v6 }
 0x42f   : > { %v4764_v5 = vadd.f32 %v1583_v33, %v4562_v31  ;;  %v3237_v29 = vpop.f32.mrb[54].mxu0 }
 0x430   : > { %v1598_v21 = vadd.f32 %v3237_v29, %v4739_v37  ;;  %v1592_v2 = vpop.f32.mrb[55].mxu0 }
 0x431   : > { %v1593_v9 = vadd.f32 %v4739_v37, %v1592_v2  ;;  %3312 = vmatprep.mubr.f32.mxu1 %v4764_v5 }
 0x432   : > { %3313 = vmatmul.mubr.f32.gmra.mrb[84].mxu1 %v4767_v40  ;;  %v4777_v31 = vadd.f32 %v1598_v21, %v4575_v10 }
 0x433   : > { %v4774_v62 = vadd.f32 %v1593_v9, %v4572_v48  ;;  %v3240_v53 = vpop.f32.mrb[56].mxu0 }
 0x434   : > { %v1608_v49 = vadd.f32 %v3240_v53, %v4739_v37  ;;  %v1602_v6 = vpop.f32.mrb[57].mxu0 }
 0x435   : > { %v1603_v25 = vadd.f32 %v4739_v37, %v1602_v6  ;;  %3315 = vmatprep.mubr.f32.mxu1 %v4774_v62 }
 0x436   : > { %3316 = vmatmul.mubr.f32.gmra.mrb[86].mxu1 %v4777_v31  ;;  %v4787_v48 = vadd.f32 %v1608_v49, %v4585_v14  ;;  %v4816_v49 = vld [vmem:[%s5132_s3] ss:$0 sm:$0xff] }
 0x437   : > { %v4784_v13 = vadd.f32 %v1603_v25, %v4582_v63  ;;  %v3243_v57 = vpop.f32.mrb[58].mxu0 }
 0x438   : > { %v1618_v4 = vadd.f32 %v3243_v57, %v4739_v37  ;;  %v1612_v10 = vpop.f32.mrb[59].mxu0 }
 0x439   : > { %v1613_v61 = vadd.f32 %v4739_v37, %v1612_v10  ;;  %3318 = vmatprep.mubr.f32.mxu1 %v4784_v13  ;;  %v480_v10 = vadd.f32 %v4465_v1, %v4816_v49  ;;  %v490_v1 = vadd.f32 %v4469_v7, %v4816_v49  ;;  %v500_v7 = vadd.f32 %v4473_v11, %v4816_v49 }
 0x43a   : > { %3319 = vmatmul.mubr.f32.gmra.mrb[88].mxu1 %v4787_v48  ;;  %v4797_v63 = vadd.f32 %v1618_v4, %v4595_v18  ;;  %v510_v11 = vadd.f32 %v4477_v15, %v4816_v49  ;;  %v520_v15 = vadd.f32 %v4481_v19, %v4816_v49  ;;  %v530_v19 = vadd.f32 %v4485_v20, %v4816_v49 }
 0x43b   : > { %v4794_v17 = vadd.f32 %v1613_v61, %v4592_v44  ;;  %v3246_v60 = vpop.f32.mrb[60].mxu0  ;;  %v540_v20 = vadd.f32 %v4489_v24, %v4816_v49  ;;  %v5161_v24 = vld [vmem:[#allocation14_spill] sm:$0xff] }
 0x43c   : > { %v1628_v33 = vadd.f32 %v3246_v60, %v4739_v37  ;;  %v1622_v14 = vpop.f32.mrb[61].mxu0 }
 0x43d   : > { %v1623_v29 = vadd.f32 %v4739_v37, %v1622_v14  ;;  %3321 = vmatprep.mubr.f32.mxu1 %v4794_v17 }
 0x43e   : > { %3322 = vmatmul.mubr.f32.gmra.mrb[90].mxu1 %v4797_v63  ;;  %v4807_v44 = vadd.f32 %v1628_v33, %v4605_v22 }
 0x43f   : > { %v4804_v21 = vadd.f32 %v1623_v29, %v4602_v55  ;;  %v3249_v2 = vpop.f32.mrb[62].mxu0 }
 0x440   : > { %v1638_v9 = vadd.f32 %v3249_v2, %v4739_v37  ;;  %v1632_v18 = vpop.f32.mrb[63].mxu0 }
 0x441   : > { %v1633_v53 = vadd.f32 %v4739_v37, %v1632_v18  ;;  %3324 = vmatprep.mubr.f32.mxu1 %v4804_v21 }
 0x442   : > { %3325 = vmatmul.mubr.f32.gmra.mrb[92].mxu1 %v4807_v44  ;;  %v4822_v22 = vadd.f32 %v1638_v9, %v4615_v26 }
 0x443   : > { %v4819_v55 = vadd.f32 %v1633_v53, %v4612_v32  ;;  %v3252_v6 = vpop.f32.mrb[64].mxu0  ;;  %v475_v32 = vadd.f32 %v4816_v49, %v4467_v3  ;;  %v485_v3 = vadd.f32 %v4816_v49, %v4471_v8  ;;  %v495_v8 = vadd.f32 %v4816_v49, %v4475_v12 }
 0x444   : > { %v1648_v25 = vadd.f32 %v3252_v6, %v4739_v37  ;;  %v1642_v57 = vpop.f32.mrb[65].mxu0  ;;  %v505_v12 = vadd.f32 %v4816_v49, %v4479_v16  ;;  %v515_v16 = vadd.f32 %v4816_v49, %v4483_v0  ;;  %v525_v0 = vadd.f32 %v4816_v49, %v4487_v23 }
 0x445   : > { %v1643_v4 = vadd.f32 %v4739_v37, %v1642_v57  ;;  %3327 = vmatprep.mubr.f32.mxu1 %v4819_v55  ;;  %v535_v23 = vadd.f32 %v4816_v49, %v4491_v27  ;;  %v5162_v27 = vld [vmem:[#allocation15_spill] sm:$0xff] }
 0x446   : > { %v1738_v61 = vadd.f32 %v1648_v25, %v4625_v30  ;;  %3328 = vmatmul.mubr.f32.gmra.mrb[94].mxu1 %v4822_v22 }
 0x447   : > { %v1737_v26 = vadd.f32 %v1643_v4, %v4622_v43  ;;  %v3255_v60 = vpop.f32.mrb[66].mxu0 }
 0x448   : > { %v1658_v33 = vadd.f32 %v3255_v60, %v4739_v37  ;;  %v1652_v14 = vpop.f32.mrb[67].mxu0  ;;  %v4835_v29 = vadd.f32 %v1738_v61, %v480_v10 }
 0x449   : > { %v1653_v2 = vadd.f32 %v4739_v37, %v1652_v14  ;;  %3330 = vmatprep.mubr.f32.mxu1 %v1737_v26  ;;  %v4838_v9 = vadd.f32 %v1737_v26, %v475_v32 }
 0x44a   : > { %v1740_v30 = vadd.f32 %v1658_v33, %v4635_v34  ;;  %3331 = vmatmul.mubr.f32.gmra.mrb[96].mxu1 %v1738_v61 }
 0x44b   : > { %v1739_v43 = vadd.f32 %v1653_v2, %v4632_v28  ;;  %v3258_v18 = vpop.f32.mrb[68].mxu0 }
 0x44c   : > { %v1668_v53 = vadd.f32 %v3258_v18, %v4739_v37  ;;  %v1662_v6 = vpop.f32.mrb[69].mxu0  ;;  %v4847_v25 = vadd.f32 %v1740_v30, %v490_v1 }
 0x44d   : > { %v1663_v57 = vadd.f32 %v4739_v37, %v1662_v6  ;;  %3333 = vmatprep.mubr.f32.mxu1 %v1739_v43  ;;  %v4850_v4 = vadd.f32 %v1739_v43, %v485_v3 }
 0x44e   : > { %v1742_v34 = vadd.f32 %v1668_v53, %v4645_v38  ;;  %3334 = vmatmul.mubr.f32.gmra.mrb[98].mxu1 %v1740_v30 }
 0x44f   : > { %v1741_v28 = vadd.f32 %v1663_v57, %v4642_v52  ;;  %v3261_v10 = vpop.f32.mrb[70].mxu0 }
 0x450   : > { %v1678_v61 = vadd.f32 %v3261_v10, %v4739_v37  ;;  %v1672_v32 = vpop.f32.mrb[71].mxu0  ;;  %v4859_v26 = vadd.f32 %v1742_v34, %v500_v7 }
 0x451   : > { %v1673_v60 = vadd.f32 %v4739_v37, %v1672_v32  ;;  %3336 = vmatprep.mubr.f32.mxu1 %v1741_v28  ;;  %v4862_v33 = vadd.f32 %v1741_v28, %v495_v8 }
 0x452   : > { %v1744_v38 = vadd.f32 %v1678_v61, %v4655_v42  ;;  %3337 = vmatmul.mubr.f32.gmra.mrb[100].mxu1 %v1742_v34 }
 0x453   : > { %v1743_v52 = vadd.f32 %v1673_v60, %v4652_v59  ;;  %v3264_v14 = vpop.f32.mrb[72].mxu0 }
 0x454   : > { %v1688_v2 = vadd.f32 %v3264_v14, %v4739_v37  ;;  %v1682_v1 = vpop.f32.mrb[73].mxu0  ;;  %v4871_v30 = vadd.f32 %v1744_v38, %v510_v11 }
 0x455   : > { %v1683_v3 = vadd.f32 %v4739_v37, %v1682_v1  ;;  %3339 = vmatprep.mubr.f32.mxu1 %v1743_v52  ;;  %v4874_v43 = vadd.f32 %v1743_v52, %v505_v12 }
 0x456   : > { %v1746_v42 = vadd.f32 %v1688_v2, %v4665_v46  ;;  %3340 = vmatmul.mubr.f32.gmra.mrb[102].mxu1 %v1744_v38 }
 0x457   : > { %v1745_v59 = vadd.f32 %v1683_v3, %v4662_v36  ;;  %v3267_v18 = vpop.f32.mrb[74].mxu0 }
 0x458   : > { %v1698_v53 = vadd.f32 %v3267_v18, %v4739_v37  ;;  %v1692_v6 = vpop.f32.mrb[75].mxu0  ;;  %v4883_v57 = vadd.f32 %v1746_v42, %v520_v15 }
 0x459   : > { %v1693_v7 = vadd.f32 %v4739_v37, %v1692_v6  ;;  %3342 = vmatprep.mubr.f32.mxu1 %v1745_v59  ;;  %v4886_v34 = vadd.f32 %v1745_v59, %v515_v16 }
 0x45a   : > { %v1748_v46 = vadd.f32 %v1698_v53, %v4675_v50  ;;  %3343 = vmatmul.mubr.f32.gmra.mrb[104].mxu1 %v1746_v42 }
 0x45b   : > { %v1747_v36 = vadd.f32 %v1693_v7, %v4672_v51  ;;  %v3270_v8 = vpop.f32.mrb[76].mxu0 }
 0x45c   : > { %v1708_v28 = vadd.f32 %v3270_v8, %v4739_v37  ;;  %v1702_v10 = vpop.f32.mrb[77].mxu0  ;;  %v4895_v61 = vadd.f32 %v1748_v46, %v530_v19 }
 0x45d   : > { %v1703_v32 = vadd.f32 %v4739_v37, %v1702_v10  ;;  %3345 = vmatprep.mubr.f32.mxu1 %v1747_v36  ;;  %v4898_v60 = vadd.f32 %v1747_v36, %v525_v0 }
 0x45e   : > { %v1750_v50 = vadd.f32 %v1708_v28, %v4685_v54  ;;  %3346 = vmatmul.mubr.f32.gmra.mrb[106].mxu1 %v1748_v46  ;;  %v550_v54 = vadd.f32 %v5161_v24, %v4816_v49 }
 0x45f   : > { %v1749_v51 = vadd.f32 %v1703_v32, %v4682_v56  ;;  %v3273_v11 = vpop.f32.mrb[78].mxu0  ;;  %v545_v56 = vadd.f32 %v4816_v49, %v5162_v27 }
 0x460   : > { %v1718_v38 = vadd.f32 %v3273_v11, %v4739_v37  ;;  %v1712_v12 = vpop.f32.mrb[79].mxu0  ;;  %v4907_v52 = vadd.f32 %v1750_v50, %v540_v20 }
 0x461   : > { %v1713_v14 = vadd.f32 %v4739_v37, %v1712_v12  ;;  %3348 = vmatprep.mubr.f32.mxu1 %v1749_v51  ;;  %v4910_v2 = vadd.f32 %v1749_v51, %v535_v23  ;;  %v4925_v37 = vld [vmem:[%s5132_s3 + $0x4] ss:$0 sm:$0xff] }
 0x462   : > { %v1752_v1 = vadd.f32 %v1718_v38, %v4695_v45  ;;  %3349 = vmatmul.mubr.f32.gmra.mrb[108].mxu1 %v1750_v50 }
 0x463   : > { %v1751_v3 = vadd.f32 %v1713_v14, %v4692_v35 }
 0x464   : > { %v4918_v15 = vadd.f32 %v1752_v1, %v550_v54 }
 0x465   : > { %3351 = vmatprep.mubr.f32.mxu1 %v1751_v3  ;;  %v4920_v42 = vadd.f32 %v1751_v3, %v545_v56 }
 0x466   : > { %3352 = vmatmul.mubr.f32.gmra.mrb[110].mxu1 %v1752_v1 }
 0x4fd   : > { %v3308_v16 = vpop.f32.mrb[80].mxu1 }
 0x4fe   : > { %v1850_v45 = vadd.f32 %v3308_v16, %v4925_v37  ;;  %v1844_v59 = vpop.f32.mrb[81].mxu1 }
 0x4ff   : > { %v1845_v18 = vadd.f32 %v4925_v37, %v1844_v59 }
 0x500   : > { %v2004_v35 = vmax.f32 %v1850_v45, 0.0 }
 0x501   : > { %v2003_v53 = vmax.f32 %v1845_v18, 0.0  ;;  %v3311_v6 = vpop.f32.mrb[82].mxu1 }
 0x502   : > { %v1860_v7 = vadd.f32 %v3311_v6, %v4925_v37  ;;  %v1854_v19 = vpop.f32.mrb[83].mxu1 }
 0x503   : > { %v1855_v46 = vadd.f32 %v4925_v37, %v1854_v19  ;;  %3386 = vmatprep.mubr.f32.mxu0 %v2003_v53 }
 0x504   : > { %3387 = vmatmul.mubr.f32.vlgmr.msra.gmra.mrb[0].mxu0 %v2004_v35  ;;  %v2006_v8 = vmax.f32 %v1860_v7, 0.0 }
 0x505   : > { %v2005_v0 = vmax.f32 %v1855_v46, 0.0  ;;  %v3314_v36 = vpop.f32.mrb[84].mxu1 }
 0x506   : > { %v1870_v28 = vadd.f32 %v3314_v36, %v4925_v37  ;;  %v1864_v10 = vpop.f32.mrb[85].mxu1 }
 0x507   : > { %v1865_v32 = vadd.f32 %v4925_v37, %v1864_v10  ;;  %3389 = vmatprep.mubr.f32.mxu0 %v2005_v0 }
 0x508   : > { %3390 = vmatmul.mubr.f32.gmra.mrb[2].mxu0 %v2006_v8  ;;  %v2008_v23 = vmax.f32 %v1870_v28, 0.0 }
 0x509   : > { %v2007_v20 = vmax.f32 %v1865_v32, 0.0  ;;  %v3317_v50 = vpop.f32.mrb[86].mxu1 }
 0x50a   : > { %v1880_v51 = vadd.f32 %v3317_v50, %v4925_v37  ;;  %v1874_v11 = vpop.f32.mrb[87].mxu1 }
 0x50b   : > { %v1875_v38 = vadd.f32 %v4925_v37, %v1874_v11  ;;  %3392 = vmatprep.mubr.f32.mxu0 %v2007_v20 }
 0x50c   : > { %3393 = vmatmul.mubr.f32.gmra.mrb[4].mxu0 %v2008_v23  ;;  %v2010_v24 = vmax.f32 %v1880_v51, 0.0 }
 0x50d   : > { %v2009_v12 = vmax.f32 %v1875_v38, 0.0  ;;  %v3320_v14 = vpop.f32.mrb[88].mxu1 }
 0x50e   : > { %v1890_v54 = vadd.f32 %v3320_v14, %v4925_v37  ;;  %v1884_v1 = vpop.f32.mrb[89].mxu1 }
 0x50f   : > { %v1885_v27 = vadd.f32 %v4925_v37, %v1884_v1  ;;  %3395 = vmatprep.mubr.f32.mxu0 %v2009_v12 }
 0x510   : > { %3396 = vmatmul.mubr.f32.gmra.mrb[6].mxu0 %v2010_v24  ;;  %v2012_v16 = vmax.f32 %v1890_v54, 0.0 }
 0x511   : > { %v2011_v56 = vmax.f32 %v1885_v27, 0.0  ;;  %v3323_v3 = vpop.f32.mrb[90].mxu1 }
 0x512   : > { %v1900_v45 = vadd.f32 %v3323_v3, %v4925_v37  ;;  %v1894_v59 = vpop.f32.mrb[91].mxu1 }
 0x513   : > { %v1895_v18 = vadd.f32 %v4925_v37, %v1894_v59  ;;  %3398 = vmatprep.mubr.f32.mxu0 %v2011_v56 }
 0x514   : > { %3399 = vmatmul.mubr.f32.gmra.mrb[8].mxu0 %v2012_v16  ;;  %v2014_v35 = vmax.f32 %v1900_v45, 0.0 }
 0x515   : > { %v2013_v53 = vmax.f32 %v1895_v18, 0.0  ;;  %v3326_v6 = vpop.f32.mrb[92].mxu1 }
 0x516   : > { %v1910_v7 = vadd.f32 %v3326_v6, %v4925_v37  ;;  %v1904_v19 = vpop.f32.mrb[93].mxu1 }
 0x517   : > { %v1905_v46 = vadd.f32 %v4925_v37, %v1904_v19  ;;  %3401 = vmatprep.mubr.f32.mxu0 %v2013_v53 }
 0x518   : > { %3402 = vmatmul.mubr.f32.gmra.mrb[10].mxu0 %v2014_v35  ;;  %v2016_v8 = vmax.f32 %v1910_v7, 0.0 }
 0x519   : > { %v2015_v0 = vmax.f32 %v1905_v46, 0.0  ;;  %v3329_v36 = vpop.f32.mrb[94].mxu1 }
 0x51a   : > { %v1920_v28 = vadd.f32 %v3329_v36, %v4925_v37  ;;  %v1914_v10 = vpop.f32.mrb[95].mxu1 }
 0x51b   : > { %v1915_v32 = vadd.f32 %v4925_v37, %v1914_v10  ;;  %3404 = vmatprep.mubr.f32.mxu0 %v2015_v0 }
 0x51c   : > { %3405 = vmatmul.mubr.f32.gmra.mrb[12].mxu0 %v2016_v8  ;;  %v2018_v23 = vmax.f32 %v1920_v28, 0.0 }
 0x51d   : > { %v2017_v20 = vmax.f32 %v1915_v32, 0.0  ;;  %v3332_v50 = vpop.f32.mrb[96].mxu1 }
 0x51e   : > { %v1930_v51 = vadd.f32 %v3332_v50, %v4925_v37  ;;  %v1924_v11 = vpop.f32.mrb[97].mxu1 }
 0x51f   : > { %v1925_v38 = vadd.f32 %v4925_v37, %v1924_v11  ;;  %3407 = vmatprep.mubr.f32.mxu0 %v2017_v20 }
 0x520   : > { %3408 = vmatmul.mubr.f32.gmra.mrb[14].mxu0 %v2018_v23  ;;  %v2020_v24 = vmax.f32 %v1930_v51, 0.0 }
 0x521   : > { %v2019_v12 = vmax.f32 %v1925_v38, 0.0  ;;  %v3335_v14 = vpop.f32.mrb[98].mxu1 }
 0x522   : > { %v1940_v54 = vadd.f32 %v3335_v14, %v4925_v37  ;;  %v1934_v1 = vpop.f32.mrb[99].mxu1 }
 0x523   : > { %v1935_v27 = vadd.f32 %v4925_v37, %v1934_v1  ;;  %3410 = vmatprep.mubr.f32.mxu0 %v2019_v12 }
 0x524   : > { %3411 = vmatmul.mubr.f32.gmra.mrb[80].mxu0 %v2020_v24  ;;  %v2022_v16 = vmax.f32 %v1940_v54, 0.0 }
 0x525   : > { %v2021_v56 = vmax.f32 %v1935_v27, 0.0  ;;  %v3338_v3 = vpop.f32.mrb[100].mxu1 }
 0x526   : > { %v1950_v45 = vadd.f32 %v3338_v3, %v4925_v37  ;;  %v1944_v59 = vpop.f32.mrb[101].mxu1 }
 0x527   : > { %v1945_v18 = vadd.f32 %v4925_v37, %v1944_v59  ;;  %3413 = vmatprep.mubr.f32.mxu0 %v2021_v56 }
 0x528   : > { %3414 = vmatmul.mubr.f32.gmra.mrb[82].mxu0 %v2022_v16  ;;  %v2024_v35 = vmax.f32 %v1950_v45, 0.0 }
 0x529   : > { %v2023_v53 = vmax.f32 %v1945_v18, 0.0  ;;  %v3341_v6 = vpop.f32.mrb[102].mxu1 }
 0x52a   : > { %v1960_v7 = vadd.f32 %v3341_v6, %v4925_v37  ;;  %v1954_v19 = vpop.f32.mrb[103].mxu1 }
 0x52b   : > { %v1955_v46 = vadd.f32 %v4925_v37, %v1954_v19  ;;  %3416 = vmatprep.mubr.f32.mxu0 %v2023_v53 }
 0x52c   : > { %3417 = vmatmul.mubr.f32.gmra.mrb[84].mxu0 %v2024_v35  ;;  %v2026_v8 = vmax.f32 %v1960_v7, 0.0  ;;  %v3674_v35 = vadd.f32 %v4816_v49, %v4747_v41  ;;  %v3680_v7 = vadd.f32 %v4816_v49, %v4757_v39  ;;  %v3686_v39 = vadd.f32 %v4816_v49, %v4767_v40 }
 0x52d   : > { %v2025_v0 = vmax.f32 %v1955_v46, 0.0  ;;  %v3344_v36 = vpop.f32.mrb[104].mxu1  ;;  %v4966_v46 = vld [vmem:[%s5132_s3 + $0x7] ss:$0 sm:$0xff] }
 0x52e   : > { %v1970_v28 = vadd.f32 %v3344_v36, %v4925_v37  ;;  %v1964_v10 = vpop.f32.mrb[105].mxu1 }
 0x52f   : > { %v1965_v32 = vadd.f32 %v4925_v37, %v1964_v10  ;;  %3419 = vmatprep.mubr.f32.mxu0 %v2025_v0  ;;  %v3683_v0 = vadd.f32 %v4816_v49, %v4754_v58  ;;  %v3681_v10 = vadd.f32 %v3680_v7, %v4966_v46 }
 0x530   : > { %3420 = vmatmul.mubr.f32.gmra.mrb[86].mxu0 %v2026_v8  ;;  %v2028_v23 = vmax.f32 %v1970_v28, 0.0 }
 0x531   : > { %v2027_v20 = vmax.f32 %v1965_v32, 0.0  ;;  %v3347_v50 = vpop.f32.mrb[106].mxu1 }
 0x532   : > { %v1980_v51 = vadd.f32 %v3347_v50, %v4925_v37  ;;  %v1974_v11 = vpop.f32.mrb[107].mxu1  ;;  %v3684_v50 = vadd.f32 %v3683_v0, %v4966_v46 }
 0x533   : > { %v1975_v38 = vadd.f32 %v4925_v37, %v1974_v11  ;;  %3422 = vmatprep.mubr.f32.mxu0 %v2027_v20  ;;  %v3692_v11 = vadd.f32 %v4816_v49, %v4777_v31 }
 0x534   : > { %3423 = vmatmul.mubr.f32.gmra.mrb[88].mxu0 %v2028_v23  ;;  %v2030_v24 = vmax.f32 %v1980_v51, 0.0  ;;  %v3687_v51 = vadd.f32 %v3686_v39, %v4966_v46 }
 0x535   : > { %v2029_v12 = vmax.f32 %v1975_v38, 0.0  ;;  %v3350_v14 = vpop.f32.mrb[108].mxu1 }
 0x536   : > { %v1990_v54 = vadd.f32 %v3350_v14, %v4925_v37  ;;  %v1984_v1 = vpop.f32.mrb[109].mxu1 }
 0x537   : > { %v1985_v27 = vadd.f32 %v4925_v37, %v1984_v1  ;;  %3425 = vmatprep.mubr.f32.mxu0 %v2029_v12  ;;  %v3695_v12 = vadd.f32 %v4816_v49, %v4774_v62  ;;  %v3693_v1 = vadd.f32 %v3692_v11, %v4966_v46  ;;  %v3728_v11 = vadd.f32 %v4838_v9, %v4966_v46 }
 0x538   : > { %3426 = vmatmul.mubr.f32.gmra.mrb[90].mxu0 %v2030_v24  ;;  %v2032_v16 = vmax.f32 %v1990_v54, 0.0  ;;  %v3740_v9 = vadd.f32 %v4859_v26, %v4966_v46  ;;  %v3752_v26 = vadd.f32 %v4874_v43, %v4966_v46  ;;  %v3764_v43 = vadd.f32 %v4895_v61, %v4966_v46 }
 0x539   : > { %v2031_v56 = vmax.f32 %v1985_v27, 0.0  ;;  %v3353_v3 = vpop.f32.mrb[110].mxu1  ;;  %v3698_v27 = vadd.f32 %v4816_v49, %v4787_v48  ;;  %v3776_v61 = vadd.f32 %v4910_v2, %v4966_v46 }
 0x53a   : > { %v2000_v45 = vadd.f32 %v3353_v3, %v4925_v37  ;;  %v1994_v59 = vpop.f32.mrb[111].mxu1  ;;  %v3701_v3 = vadd.f32 %v4816_v49, %v4784_v13 }
 0x53b   : > { %v1995_v18 = vadd.f32 %v4925_v37, %v1994_v59  ;;  %3428 = vmatprep.mubr.f32.mxu0 %v2031_v56  ;;  %v3677_v37 = vadd.f32 %v4816_v49, %v4744_v47  ;;  %v3689_v47 = vadd.f32 %v4816_v49, %v4764_v5  ;;  %v3696_v56 = vadd.f32 %v3695_v12, %v4966_v46 }
 0x53c   : > { %3429 = vmatmul.mubr.f32.gmra.mrb[92].mxu0 %v2032_v16  ;;  %v2034_v6 = vmax.f32 %v2000_v45, 0.0  ;;  %v3699_v59 = vadd.f32 %v3698_v27, %v4966_v46 }
 0x53d   : > { %v2033_v53 = vmax.f32 %v1995_v18, 0.0  ;;  %v3690_v38 = vadd.f32 %v3689_v47, %v4966_v46  ;;  %v3704_v18 = vadd.f32 %v4816_v49, %v4797_v63 }
 0x53f   : > { %3431 = vmatprep.mubr.f32.mxu0 %v2033_v53  ;;  %v3702_v53 = vadd.f32 %v3701_v3, %v4966_v46 }
 0x540   : > { %3432 = vmatmul.mubr.f32.gmra.mrb[94].mxu0 %v2034_v6  ;;  %v3707_v6 = vadd.f32 %v4816_v49, %v4794_v17 }
 0x542   : > { %v3708_v0 = vadd.f32 %v3707_v6, %v4966_v46 }
 0x5d7   : > { %v3388_v19 = vpop.f32.mrb[0].mxu0 }
 0x5d8   : > { %v3675_v36 = vadd.f32 %v3674_v35, %v3388_v19  ;;  %v2126_v8 = vpop.f32.mrb[1].mxu0  ;;  %v3705_v19 = vadd.f32 %v3704_v18, %v4966_v46 }
 0x5d9   : > { %v3678_v28 = vadd.f32 %v3677_v37, %v2126_v8  ;;  %v3710_v37 = vadd.f32 %v4816_v49, %v4807_v44 }
 0x5da   : > { %v3676_v41 = vadd.f32 %v3675_v36, %v4966_v46  ;;  %v3713_v36 = vadd.f32 %v4816_v49, %v4804_v21 }
 0x5db   : > { %v3679_v32 = vadd.f32 %v3678_v28, %v4966_v46  ;;  %v3391_v20 = vpop.f32.mrb[2].mxu0 }
 0x5dc   : > { %2350 = vst [vmem:[%s4981_s14 + $0x8] sm:$0xff] %v3676_v41  ;;  %v3682_v58 = vadd.f32 %v3681_v10, %v3391_v20  ;;  %v2136_v23 = vpop.f32.mrb[3].mxu0  ;;  %v3711_v41 = vadd.f32 %v3710_v37, %v4966_v46  ;;  %v3716_v10 = vadd.f32 %v4816_v49, %v4822_v22  ;;  %v3714_v39 = vadd.f32 %v3713_v36, %v4966_v46 }
 0x5dd   : > { %2349 = vst [vmem:[%s4981_s14] sm:$0xff] %v3679_v32  ;;  %v3685_v40 = vadd.f32 %v3684_v50, %v2136_v23  ;;  %v3719_v32 = vadd.f32 %v4816_v49, %v4819_v55  ;;  %v3724_v49 = vadd.f32 %v4835_v29, %v4966_v46  ;;  %v3736_v29 = vadd.f32 %v4850_v4, %v4966_v46 }
 0x5de   : > { %2352 = vst [vmem:[%s4981_s14 + $0x18] sm:$0xff] %v3682_v58  ;;  %v3717_v47 = vadd.f32 %v3716_v10, %v4966_v46  ;;  %v3748_v4 = vadd.f32 %v4871_v30, %v4966_v46  ;;  %v3760_v30 = vadd.f32 %v4886_v34, %v4966_v46  ;;  %v3772_v34 = vadd.f32 %v4907_v52, %v4966_v46 }
 0x5df   : > { %2351 = vst [vmem:[%s4981_s14 + $0x10] sm:$0xff] %v3685_v40  ;;  %v3394_v5 = vpop.f32.mrb[4].mxu0  ;;  %v3720_v22 = vadd.f32 %v3719_v32, %v4966_v46 }
 0x5e0   : > { %v3688_v14 = vadd.f32 %v3687_v51, %v3394_v5  ;;  %v2146_v24 = vpop.f32.mrb[5].mxu0 }
 0x5e1   : > { %v3691_v54 = vadd.f32 %v3690_v38, %v2146_v24 }
 0x5e2   : > { %2354 = vst [vmem:[%s4981_s14 + $0x28] sm:$0xff] %v3688_v14  ;;  %v3732_v14 = vadd.f32 %v4847_v25, %v4966_v46  ;;  %v3744_v25 = vadd.f32 %v4862_v33, %v4966_v46  ;;  %v3756_v33 = vadd.f32 %v4883_v57, %v4966_v46  ;;  %v3768_v57 = vadd.f32 %v4898_v60, %v4966_v46 }
 0x5e3   : > { %2353 = vst [vmem:[%s4981_s14 + $0x20] sm:$0xff] %v3691_v54  ;;  %v3397_v31 = vpop.f32.mrb[6].mxu0  ;;  %v3780_v60 = vadd.f32 %v4918_v15, %v4966_v46 }
 0x5e4   : > { %v3694_v16 = vadd.f32 %v3693_v1, %v3397_v31  ;;  %v2156_v62 = vpop.f32.mrb[7].mxu0 }
 0x5e5   : > { %v3697_v45 = vadd.f32 %v3696_v56, %v2156_v62 }
 0x5e6   : > { %2356 = vst [vmem:[%s4981_s14 + $0x38] sm:$0xff] %v3694_v16 }
 0x5e7   : > { %2355 = vst [vmem:[%s4981_s14 + $0x30] sm:$0xff] %v3697_v45  ;;  %v3400_v48 = vpop.f32.mrb[8].mxu0 }
 0x5e8   : > { %v3700_v35 = vadd.f32 %v3699_v59, %v3400_v48  ;;  %v2166_v13 = vpop.f32.mrb[9].mxu0 }
 0x5e9   : > { %v3703_v7 = vadd.f32 %v3702_v53, %v2166_v13 }
 0x5ea   : > { %2358 = vst [vmem:[%s4981_s14 + $0x48] sm:$0xff] %v3700_v35 }
 0x5eb   : > { %2357 = vst [vmem:[%s4981_s14 + $0x40] sm:$0xff] %v3703_v7  ;;  %v3403_v63 = vpop.f32.mrb[10].mxu0 }
 0x5ec   : > { %v3706_v17 = vadd.f32 %v3705_v19, %v3403_v63  ;;  %v2176_v8 = vpop.f32.mrb[11].mxu0 }
 0x5ed   : > { %v3709_v28 = vadd.f32 %v3708_v0, %v2176_v8  ;;  %v3784_v8 = vadd.f32 %v4920_v42, %v4966_v46 }
 0x5ee   : > { %2360 = vst [vmem:[%s4981_s14 + $0x58] sm:$0xff] %v3706_v17 }
 0x5ef   : > { %2359 = vst [vmem:[%s4981_s14 + $0x50] sm:$0xff] %v3709_v28  ;;  %v3406_v44 = vpop.f32.mrb[12].mxu0 }
 0x5f0   : > { %v3712_v21 = vadd.f32 %v3711_v41, %v3406_v44  ;;  %v2186_v20 = vpop.f32.mrb[13].mxu0 }
 0x5f1   : > { %v3715_v50 = vadd.f32 %v3714_v39, %v2186_v20 }
 0x5f2   : > { %2362 = vst [vmem:[%s4981_s14 + $0x68] sm:$0xff] %v3712_v21 }
 0x5f3   : > { %2361 = vst [vmem:[%s4981_s14 + $0x60] sm:$0xff] %v3715_v50  ;;  %v3409_v58 = vpop.f32.mrb[14].mxu0 }
 0x5f4   : > { %v3718_v23 = vadd.f32 %v3717_v47, %v3409_v58  ;;  %v2196_v40 = vpop.f32.mrb[15].mxu0 }
 0x5f5   : > { %v3721_v51 = vadd.f32 %v3720_v22, %v2196_v40 }
 0x5f6   : > { %2364 = vst [vmem:[%s4981_s14 + $0x78] sm:$0xff] %v3718_v23 }
 0x5f7   : > { %2363 = vst [vmem:[%s4981_s14 + $0x70] sm:$0xff] %v3721_v51  ;;  %v3412_v55 = vpop.f32.mrb[80].mxu0 }
 0x5f8   : > { %v3725_v5 = vadd.f32 %v3724_v49, %v3412_v55  ;;  %v2206_v38 = vpop.f32.mrb[81].mxu0 }
 0x5f9   : > { %v3729_v12 = vadd.f32 %v3728_v11, %v2206_v38 }
 0x5fa   : > { %2366 = vst [vmem:[%s4981_s14 + $0x88] sm:$0xff] %v3725_v5 }
 0x5fb   : > { %2365 = vst [vmem:[%s4981_s14 + $0x80] sm:$0xff] %v3729_v12  ;;  %v3415_v24 = vpop.f32.mrb[82].mxu0 }
 0x5fc   : > { %v3733_v54 = vadd.f32 %v3732_v14, %v3415_v24  ;;  %v2216_v1 = vpop.f32.mrb[83].mxu0 }
 0x5fd   : > { %v3737_v27 = vadd.f32 %v3736_v29, %v2216_v1 }
 0x5fe   : > { %2368 = vst [vmem:[%s4981_s14 + $0x98] sm:$0xff] %v3733_v54 }
 0x5ff   : > { %2367 = vst [vmem:[%s4981_s14 + $0x90] sm:$0xff] %v3737_v27  ;;  %v3418_v31 = vpop.f32.mrb[84].mxu0 }
 0x600   : > { %v3741_v56 = vadd.f32 %v3740_v9, %v3418_v31  ;;  %v2226_v3 = vpop.f32.mrb[85].mxu0 }
 0x601   : > { %v3745_v16 = vadd.f32 %v3744_v25, %v2226_v3 }
 0x602   : > { %2370 = vst [vmem:[%s4981_s14 + $0xa8] sm:$0xff] %v3741_v56 }
 0x603   : > { %2369 = vst [vmem:[%s4981_s14 + $0xa0] sm:$0xff] %v3745_v16  ;;  %v3421_v62 = vpop.f32.mrb[86].mxu0 }
 0x604   : > { %v3749_v45 = vadd.f32 %v3748_v4, %v3421_v62  ;;  %v2236_v59 = vpop.f32.mrb[87].mxu0 }
 0x605   : > { %v3753_v18 = vadd.f32 %v3752_v26, %v2236_v59 }
 0x606   : > { %2372 = vst [vmem:[%s4981_s14 + $0xb8] sm:$0xff] %v3749_v45 }
 0x607   : > { %2371 = vst [vmem:[%s4981_s14 + $0xb0] sm:$0xff] %v3753_v18  ;;  %v3424_v48 = vpop.f32.mrb[88].mxu0 }
 0x608   : > { %v3757_v53 = vadd.f32 %v3756_v33, %v3424_v48  ;;  %v2246_v6 = vpop.f32.mrb[89].mxu0 }
 0x609   : > { %v3761_v35 = vadd.f32 %v3760_v30, %v2246_v6 }
 0x60a   : > { %2374 = vst [vmem:[%s4981_s14 + $0xc8] sm:$0xff] %v3757_v53 }
 0x60b   : > { %2373 = vst [vmem:[%s4981_s14 + $0xc0] sm:$0xff] %v3761_v35  ;;  %v3427_v13 = vpop.f32.mrb[90].mxu0 }
 0x60c   : > { %v3765_v7 = vadd.f32 %v3764_v43, %v3427_v13  ;;  %v2256_v19 = vpop.f32.mrb[91].mxu0 }
 0x60d   : > { %v3769_v37 = vadd.f32 %v3768_v57, %v2256_v19 }
 0x60e   : > { %2376 = vst [vmem:[%s4981_s14 + $0xd8] sm:$0xff] %v3765_v7 }
 0x60f   : > { %2375 = vst [vmem:[%s4981_s14 + $0xd0] sm:$0xff] %v3769_v37  ;;  %v3430_v63 = vpop.f32.mrb[92].mxu0 }
 0x610   : > { %v3773_v0 = vadd.f32 %v3772_v34, %v3430_v63  ;;  %v2266_v36 = vpop.f32.mrb[93].mxu0 }
 0x611   : > { %v3777_v17 = vadd.f32 %v3776_v61, %v2266_v36 }
 0x612   : > { %2378 = vst [vmem:[%s4981_s14 + $0xe8] sm:$0xff] %v3773_v0 }
 0x613   : > { %2377 = vst [vmem:[%s4981_s14 + $0xe0] sm:$0xff] %v3777_v17  ;;  %v3433_v52 = vpop.f32.mrb[94].mxu0 }
 0x614   : > { %v3781_v28 = vadd.f32 %v3780_v60, %v3433_v52  ;;  %v2276_v2 = vpop.f32.mrb[95].mxu0 }
 0x615   : > { %v3785_v41 = vadd.f32 %v3784_v8, %v2276_v2 }
 0x616   : > { %2380 = vst [vmem:[%s4981_s14 + $0xf8] sm:$0xff] %v3781_v28 }
 0x617   : > { %2379 = vst [vmem:[%s4981_s14 + $0xf0] sm:$0xff] %v3785_v41 }
 0x618   : > { %3969 = shalt.err (!%p3966_p6)
}
 0x619   : > { %s3970_s10 = scalar_lea.hbm %s5082_s7, 4096  ;;  %s3974_s25 = scalar_lea.hbm %s5133_s4, 16384 }
 0x61a   : > { %p3971_p8 = scmp.ne.s32.totalorder %s5082_s7, %s3970_s10  ;;  %p3975_p4 = scmp.lt.u32.totalorder %s5082_s7, %s5133_s4 }
 0x61b   : > { %p3976_p10 = scmp.lt.u32.totalorder %s3974_s25, %s3970_s10  ;;  %p3978_p3 = scmp.lt.u32.totalorder %s3970_s10, %s5082_s7 }
 0x61c   : > { %p3972_p11 = pnand %p3971_p8, %p4151_p12 }
 0x61d   : > { %p3977_p13 = por %p3976_p10, %p3975_p4 }
 0x61e   : > { %p3973_p0 = pneg %p3972_p11 }
 0x61f   : > { %p3979_p7 = por %p3978_p3, %p3977_p13 }
 0x621   : > { %p3980_p9 = pnand %p3979_p7, %p3973_p0 }
 0x623   : > { %3983 = shalt.err (!%p3980_p9)
}
 0x624   : > { %s4038_s9 = smov 128   ;;  %s4039_s11 = smov 8  }
 0x625   : > { %3810 = dma.vmem_to_hbm [thread:$0]  (%p4151_p12), %s5084_s12, 4096, %s5082_s7, %s2382_s19, %s4038_s9, %s4038_s9, %s4039_s11  }
 0x626 PF: > { %p3830_p1 = scmp.ge.s32.totalorder %s4030_s18, 2  ;;  %s2410_s23 = sand.u32 1, %s4018_s15  }
 0x627   : > { %p5163_p5 = scmp.ne.s32.totalorder %s5144_s22, 0  ;;  %s2411_s14 = scalar_lea.sflag [#allocation4], %s2410_s23 }
 0x629   : > { %p3824_p2 = pnand %p3830_p1, %p5163_p5 }
 0x62b   : > { %4013 = dma.done.wait (!%p3824_p2), %s2411_s14, 4096  }
 0x62c   : > { %4015 = vsyncadd (!%p3824_p2), %s2411_s14, 4294963200  ;;  %s5164_s20 = sld [smem:[#allocation13_spill]]  ;;  %p20_p6 = scmp.ge.s32.totalorder %s4118_s27, 6  }
 0x62d   : > { %s5165_s15 = smov %s4022_s16  ;;  %s5166_s16 = smov %s4026_s17 }
 0x62e   : > { %s5168_s18 = smov %s4118_s27  ;;  %22 = sbr.rel (!%p20_p6) target bundleno = 10 (0xa), region = 111 }
 0x632   : > { %s5167_s17 = smov %s5164_s20 }
 0x635   :  { %2416 = vsyncpa [#allocation3], 1 }
 0x636   :  { %2418 = vsyncpa [#allocation3 + $0x1], 1 }
 0x637   :  { %2419 = vsyncpa [#allocation6], 1 }
 0x638   :  { %2421 = vsyncpa [#allocation6 + $0x1], 1 }
 0x639   :  { %2422 = vsyncpa [#allocation4], 1 }
 0x63a   :  { %2424 = vsyncpa [#allocation4 + $0x1], 1 }

</bundles_post_ra>
